<compile_context>
chip_gen: v6e
topology: v6e:2x2x1
jax: 0.10.0
libtpu: 0.0.40
codegen_flags: <defaults>
</compile_context>

<pallas_src>
import functools
import math

import jax
import jax.numpy as jnp
from jax.experimental import pallas as pl
from jax.experimental.pallas import tpu as pltpu

# ---------------------------------------------------------------------------
# Tiling / dtype constants
# ---------------------------------------------------------------------------
_TM = 256            # activation-row tile
_TN = 1536           # output-feature tile (FFN up)
_TQ = 256            # attention query tile
_TKV = 512           # attention kv tile
_VMEM_LIMIT = 32 << 20
_ACT_DTYPE = jnp.bfloat16

_VMEM_SPEC = pl.BlockSpec(memory_space=pltpu.MemorySpace.VMEM)


def _tile(dim, pref, mult):
    """Largest multiple of `mult` <= pref that divides dim; else the full dim."""
    if dim <= pref:
        return dim
    t = (pref // mult) * mult
    while t >= mult:
        if dim % t == 0:
            return t
        t -= mult
    return dim


def _mm_cost(m, k, n, transcendentals=0):
    return pl.CostEstimate(flops=2 * m * k * n,
                           transcendentals=transcendentals,
                           bytes_accessed=2 * (m * k + k * n + m * n))


# ---------------------------------------------------------------------------
# Kernel 1: fused Q|K|V projection  ->  qkv[3, M, H]   (full-K, lane-dense)
# ---------------------------------------------------------------------------
def _qkv_kernel(x_ref, w_ref, b_ref, o_ref):
    o_ref[...] = (jnp.dot(x_ref[...], w_ref[...],
                          preferred_element_type=jnp.float32)
                  + b_ref[...]).astype(o_ref.dtype)


def pallas_qkv_proj(x, wqkv, bqkv):
    """x:[M,H] bf16, wqkv:[3,H,H] bf16 (scale folded into Wq), bqkv:[3,1,H] f32
       -> qkv:[3,M,H] bf16 (q | k | v sections)."""
    M, H = x.shape
    tm = _tile(M, _TM, 16)
    grid = (3, M // tm)          # section outer -> weights streamed once each
    return pl.pallas_call(
        _qkv_kernel,
        out_shape=jax.ShapeDtypeStruct((3, M, H), _ACT_DTYPE),
        grid=grid,
        in_specs=[
            pl.BlockSpec((tm, H), lambda s, i: (i, 0)),
            pl.BlockSpec((None, H, H), lambda s, i: (s, 0, 0)),
            pl.BlockSpec((None, 1, H), lambda s, i: (s, 0, 0)),
        ],
        out_specs=pl.BlockSpec((None, tm, H), lambda s, i: (s, i, 0)),
        compiler_params=pltpu.CompilerParams(
            dimension_semantics=("parallel", "parallel"),
            vmem_limit_bytes=_VMEM_LIMIT),
        cost_estimate=_mm_cost(M, H, 3 * H),
    )(x, wqkv, bqkv)


# ---------------------------------------------------------------------------
# Kernel 2: flash attention, ALL heads per grid step, grid=(B, nq, nkv)
# ---------------------------------------------------------------------------
def _flash_attn_kernel(q_ref, k_ref, v_ref, bias_ref, o_ref,
                       m_sc, l_sc, acc_sc, *, heads, head_dim):
    ki = pl.program_id(2)

    @pl.when(ki == 0)
    def _():
        m_sc[...] = jnp.full_like(m_sc, -1e30)
        l_sc[...] = jnp.zeros_like(l_sc)
        acc_sc[...] = jnp.zeros_like(acc_sc)

    bias = bias_ref[...]                              # [1, tkv] f32
    for g in range(heads):                            # static unroll
        lo, hi = g * head_dim, (g + 1) * head_dim
        q = q_ref[:, lo:hi]                           # [tq, dh]  bf16 (pre-scaled)
        k = k_ref[:, lo:hi]                           # [tkv, dh] bf16
        s = jax.lax.dot_general(q, k, (((1,), (1,)), ((), ())),
                                preferred_element_type=jnp.float32)   # [tq, tkv]
        s = s + bias

        m_prev = m_sc[g]                              # [tq, 1]
        m_new = jnp.maximum(m_prev, jnp.max(s, axis=-1, keepdims=True))
        alpha = jnp.exp(m_prev - m_new)
        p = jnp.exp(s - m_new)                        # [tq, tkv] f32
        l_sc[g] = alpha * l_sc[g] + jnp.sum(p, axis=-1, keepdims=True)
        acc_sc[g] = alpha * acc_sc[g] + jnp.dot(
            p.astype(v_ref.dtype), v_ref[:, lo:hi],
            preferred_element_type=jnp.float32)
        m_sc[g] = m_new

    @pl.when(ki == pl.num_programs(2) - 1)
    def _():
        for g in range(heads):
            lo, hi = g * head_dim, (g + 1) * head_dim
            inv = pl.reciprocal(l_sc[g], approx=True)
            o_ref[:, lo:hi] = (acc_sc[g] * inv).astype(o_ref.dtype)


def pallas_flash_attention(qkv, mask_bias, *, batch, seq, heads, head_dim):
    """qkv:[3, B*S, H] bf16, mask_bias:[B,1,S] f32 -> ctx:[B*S, H] bf16
       (heads concatenated along the last dim, ready for the output matmul)."""
    B, S, nh, dh = batch, seq, heads, head_dim
    H = nh * dh
    M = B * S
    tq = _tile(S, _TQ, 16)
    tkv = _tile(S, _TKV, 128)
    nq, nkv = S // tq, S // tkv
    grid = (B, nq, nkv)
    return pl.pallas_call(
        functools.partial(_flash_attn_kernel, heads=nh, head_dim=dh),
        out_shape=jax.ShapeDtypeStruct((M, H), _ACT_DTYPE),
        grid=grid,
        in_specs=[
            pl.BlockSpec((None, tq, H), lambda b, qi, ki: (0, b * nq + qi, 0)),
            pl.BlockSpec((None, tkv, H), lambda b, qi, ki: (1, b * nkv + ki, 0)),
            pl.BlockSpec((None, tkv, H), lambda b, qi, ki: (2, b * nkv + ki, 0)),
            pl.BlockSpec((None, 1, tkv), lambda b, qi, ki: (b, 0, ki)),
        ],
        out_specs=pl.BlockSpec((tq, H), lambda b, qi, ki: (b * nq + qi, 0)),
        scratch_shapes=[
            pltpu.VMEM((nh, tq, 1), jnp.float32),     # running max
            pltpu.VMEM((nh, tq, 1), jnp.float32),     # running denom
            pltpu.VMEM((nh, tq, dh), jnp.float32),    # running output
        ],
        compiler_params=pltpu.CompilerParams(
            dimension_semantics=("parallel", "parallel", "arbitrary"),
            vmem_limit_bytes=_VMEM_LIMIT),
        cost_estimate=pl.CostEstimate(
            flops=4 * B * nh * S * S * dh,
            transcendentals=2 * B * nh * S * S,
            bytes_accessed=(M * H * 2                  # Q read once
                            + 2 * nq * M * H * 2       # K,V re-read per q-tile
                            + M * H * 2                # output
                            + B * S * 4 * nq)),        # mask bias
    )(qkv, qkv, qkv, mask_bias)


# ---------------------------------------------------------------------------
# Kernel 3: linear + bias + activation   (full-K, weight-section axis outer)
# ---------------------------------------------------------------------------
def _linear_act_kernel(x_ref, w_ref, b_ref, o_ref, *, activation):
    y = jnp.dot(x_ref[...], w_ref[...],
                preferred_element_type=jnp.float32) + b_ref[...]
    if activation == "relu":
        y = jnp.maximum(y, 0.0)
    elif activation == "gelu":
        y = jax.nn.gelu(y, approximate=True)
    elif activation == "tanh":
        y = jnp.tanh(y)
    o_ref[...] = y.astype(o_ref.dtype)


def pallas_linear_act(x, w, b, activation="none"):
    """x:[M,K] bf16, w:[K,N] bf16, b:[1,N] f32 -> act(x@w+b):[M,N] bf16."""
    M, K = x.shape
    N = w.shape[1]
    tm = _tile(M, _TM, 16)
    tn = _tile(N, _TN, 128)
    grid = (N // tn, M // tm)     # weight section outer -> weights stream once
    return pl.pallas_call(
        functools.partial(_linear_act_kernel, activation=activation),
        out_shape=jax.ShapeDtypeStruct((M, N), _ACT_DTYPE),
        grid=grid,
        in_specs=[
            pl.BlockSpec((tm, K), lambda j, i: (i, 0)),
            pl.BlockSpec((K, tn), lambda j, i: (0, j)),
            pl.BlockSpec((1, tn), lambda j, i: (0, j)),
        ],
        out_specs=pl.BlockSpec((tm, tn), lambda j, i: (i, j)),
        compiler_params=pltpu.CompilerParams(
            dimension_semantics=("parallel", "parallel"),
            vmem_limit_bytes=_VMEM_LIMIT),
        cost_estimate=_mm_cost(M, K, N, transcendentals=M * N),
    )(x, w, b)


# ---------------------------------------------------------------------------
# Kernel 4: matmul + bias + residual + LayerNorm  (full-K, full-N, one step)
# ---------------------------------------------------------------------------
def _matmul_res_ln_kernel(x_ref, w_ref, b_ref, res_ref, g_ref, beta_ref,
                          o_ref, *, eps):
    y = jnp.dot(x_ref[...], w_ref[...], preferred_element_type=jnp.float32)
    y = y + b_ref[...] + res_ref[...].astype(jnp.float32)
    mu = jnp.mean(y, axis=-1, keepdims=True)
    var = jnp.mean(jnp.square(y - mu), axis=-1, keepdims=True)
    y = (y - mu) * jax.lax.rsqrt(var + eps)
    o_ref[...] = (y * g_ref[...] + beta_ref[...]).astype(o_ref.dtype)


def pallas_matmul_res_ln(x, w, b, resid, gamma, beta, eps=1e-12):
    """x:[M,K] bf16, w:[K,H] bf16 -> LayerNorm(x@w + b + resid):[M,H] bf16."""
    M, K = x.shape
    H = w.shape[1]
    tm = _tile(M, _TM, 16)
    grid = (M // tm,)
    return pl.pallas_call(
        functools.partial(_matmul_res_ln_kernel, eps=eps),
        out_shape=jax.ShapeDtypeStruct((M, H), _ACT_DTYPE),
        grid=grid,
        in_specs=[
            pl.BlockSpec((tm, K), lambda i: (i, 0)),
            pl.BlockSpec((K, H), lambda i: (0, 0)),
            pl.BlockSpec((1, H), lambda i: (0, 0)),
            pl.BlockSpec((tm, H), lambda i: (i, 0)),
            pl.BlockSpec((1, H), lambda i: (0, 0)),
            pl.BlockSpec((1, H), lambda i: (0, 0)),
        ],
        out_specs=pl.BlockSpec((tm, H), lambda i: (i, 0)),
        compiler_params=pltpu.CompilerParams(
            dimension_semantics=("parallel",),
            vmem_limit_bytes=_VMEM_LIMIT),
        cost_estimate=_mm_cost(M, K, H),
    )(x, w, b, resid, gamma, beta)


# ---------------------------------------------------------------------------
# Kernel 5: fused classification head (pooler tanh + fc1/ReLU + fc2/ReLU + fc3)
# ---------------------------------------------------------------------------
def _head_kernel(cls_ref, wp_ref, bp_ref, w1_ref, b1_ref, w2_ref, b2_ref,
                 w3_ref, b3_ref, o_ref):
    # BERT pooler: tanh(cls @ Wp + bp).  Dropout(p=0.2) is identity in eval.
    pooled = jnp.tanh(
        jnp.dot(cls_ref[...], wp_ref[...], preferred_element_type=jnp.float32)
        + bp_ref[...])
    h1 = jnp.maximum(
        jnp.dot(pooled.astype(_ACT_DTYPE), w1_ref[...],
                preferred_element_type=jnp.float32) + b1_ref[...], 0.0)
    h2 = jnp.maximum(
        jnp.dot(h1.astype(_ACT_DTYPE), w2_ref[...],
                preferred_element_type=jnp.float32) + b2_ref[...], 0.0)
    o_ref[...] = (jnp.dot(h2.astype(_ACT_DTYPE), w3_ref[...],
                          preferred_element_type=jnp.float32)
                  + b3_ref[...]).astype(o_ref.dtype)


def pallas_head(cls, hp):
    """cls:[B,H] bf16 -> logits padded to 128 lanes (lane-dense store)."""
    B = cls.shape[0]
    n_pad = hp["fc3_w"].shape[1]
    return pl.pallas_call(
        _head_kernel,
        out_shape=jax.ShapeDtypeStruct((B, n_pad), jnp.float32),
        in_specs=[_VMEM_SPEC] * 9,
        out_specs=_VMEM_SPEC,
        compiler_params=pltpu.CompilerParams(vmem_limit_bytes=_VMEM_LIMIT),
    )(cls, hp["pooler_w"], hp["pooler_b"], hp["fc1_w"], hp["fc1_b"],
      hp["fc2_w"], hp["fc2_b"], hp["fc3_w"], hp["fc3_b"])


# ---------------------------------------------------------------------------
# Plain-JAX glue (embedding gather + embedding LayerNorm only)
# ---------------------------------------------------------------------------
def _layer_norm_f32(x, gamma, beta, eps=1e-12):
    mu = jnp.mean(x, axis=-1, keepdims=True)
    var = jnp.mean(jnp.square(x - mu), axis=-1, keepdims=True)
    return (x - mu) * jax.lax.rsqrt(var + eps) * gamma + beta


def bert_encoder(kp, input_ids, attention_mask, token_type_ids, cfg):
    B, S = input_ids.shape
    H, nh = cfg["hidden"], cfg["heads"]
    dh = H // nh
    M = B * S

    emb = (jnp.take(kp["word_emb"], input_ids, axis=0)
           + kp["pos_emb"][None, :S, :]
           + jnp.take(kp["type_emb"], token_type_ids, axis=0))
    x = _layer_norm_f32(emb, kp["emb_ln_g"], kp["emb_ln_b"])
    x = x.reshape(M, H).astype(_ACT_DTYPE)

    # additive attention-mask bias, [B, 1, S] f32 (finite, BERT semantics)
    mask_bias = ((1.0 - attention_mask.astype(jnp.float32)) * -1e9)[:, None, :]

    for lyr in kp["layers"]:
        qkv = pallas_qkv_proj(x, lyr["wqkv"], lyr["bqkv"])            # [3,M,H]
        ctx = pallas_flash_attention(qkv, mask_bias, batch=B, seq=S,
                                     heads=nh, head_dim=dh)           # [M,H]
        x = pallas_matmul_res_ln(ctx, lyr["wo"], lyr["bo"], x,
                                 lyr["ln1_g"], lyr["ln1_b"])          # [M,H]
        inter = pallas_linear_act(x, lyr["wi"], lyr["bi"], activation="gelu")
        x = pallas_matmul_res_ln(inter, lyr["wo2"], lyr["bo2"], x,
                                 lyr["ln2_g"], lyr["ln2_b"])          # [M,H]
    return x.reshape(B, S, H)


def sentiment_forward(kernel_params, input_ids, attention_mask, token_type_ids, cfg):
    hidden = bert_encoder(kernel_params, input_ids, attention_mask,
                          token_type_ids, cfg)
    cls = hidden[:, 0, :]                                  # first-token repr, bf16
    logits_pad = pallas_head(cls, kernel_params["head"])   # [B, 128] lane-dense
    return logits_pad[:, :cfg["output_size"]]


# ---------------------------------------------------------------------------
# Deterministic synthetic parameters (PyTorch-like layout) + kernel repack
# ---------------------------------------------------------------------------
def init_params(key, cfg):
    H, I = cfg["hidden"], cfg["intermediate"]
    std = 0.02

    def dense(k, din, dout):
        return jax.random.normal(k, (din, dout), jnp.float32) * std

    keys = iter(jax.random.split(key, 256))
    params = {
        "word_emb": jax.random.normal(next(keys), (cfg["vocab"], H), jnp.float32) * std,
        "pos_emb": jax.random.normal(next(keys), (cfg["max_pos"], H), jnp.float32) * std,
        "type_emb": jax.random.normal(next(keys), (cfg["type_vocab"], H), jnp.float32) * std,
        "emb_ln_g": jnp.ones((H,), jnp.float32),
        "emb_ln_b": jnp.zeros((H,), jnp.float32),
        "layers": [],
        "pooler_w": dense(next(keys), H, H),
        "pooler_b": jnp.zeros((H,), jnp.float32),
        "fc1_w": dense(next(keys), H, 256),
        "fc1_b": jnp.zeros((256,), jnp.float32),
        "fc2_w": dense(next(keys), 256, 128),
        "fc2_b": jnp.zeros((128,), jnp.float32),
        "fc3_w": dense(next(keys), 128, cfg["output_size"]),
        "fc3_b": jnp.zeros((cfg["output_size"],), jnp.float32),
    }
    for _ in range(cfg["layers"]):
        params["layers"].append({
            "wq": dense(next(keys), H, H), "bq": jnp.zeros((H,), jnp.float32),
            "wk": dense(next(keys), H, H), "bk": jnp.zeros((H,), jnp.float32),
            "wv": dense(next(keys), H, H), "bv": jnp.zeros((H,), jnp.float32),
            "wo": dense(next(keys), H, H), "bo": jnp.zeros((H,), jnp.float32),
            "ln1_g": jnp.ones((H,), jnp.float32), "ln1_b": jnp.zeros((H,), jnp.float32),
            "wi": dense(next(keys), H, I), "bi": jnp.zeros((I,), jnp.float32),
            "wo2": dense(next(keys), I, H), "bo2": jnp.zeros((H,), jnp.float32),
            "ln2_g": jnp.ones((H,), jnp.float32), "ln2_b": jnp.zeros((H,), jnp.float32),
        })
    return params


def prepare_params(params, cfg):
    """Repack PyTorch-layout params into kernel layout:
       - Q|K|V weights stacked as [3, H, H] bf16 with 1/sqrt(dh) folded into Wq/bq,
       - bf16 weights, f32 biases / LN params, fc3 padded to 128 lanes."""
    H, nh = cfg["hidden"], cfg["heads"]
    dh = H // nh
    inv_scale = 1.0 / math.sqrt(dh)
    n_pad = ((cfg["output_size"] + 127) // 128) * 128

    kp = {
        "word_emb": params["word_emb"], "pos_emb": params["pos_emb"],
        "type_emb": params["type_emb"],
        "emb_ln_g": params["emb_ln_g"], "emb_ln_b": params["emb_ln_b"],
        "layers": [],
        "head": {
            "pooler_w": params["pooler_w"].astype(_ACT_DTYPE),
            "pooler_b": params["pooler_b"].reshape(1, -1),
            "fc1_w": params["fc1_w"].astype(_ACT_DTYPE),
            "fc1_b": params["fc1_b"].reshape(1, -1),
            "fc2_w": params["fc2_w"].astype(_ACT_DTYPE),
            "fc2_b": params["fc2_b"].reshape(1, -1),
            "fc3_w": jnp.pad(params["fc3_w"],
                             ((0, 0), (0, n_pad - cfg["output_size"]))).astype(_ACT_DTYPE),
            "fc3_b": jnp.pad(params["fc3_b"],
                             (0, n_pad - cfg["output_size"])).reshape(1, -1),
        },
    }
    for lyr in params["layers"]:
        wqkv = jnp.stack(
            [lyr["wq"] * inv_scale, lyr["wk"], lyr["wv"]], axis=0).astype(_ACT_DTYPE)
        bqkv = jnp.stack(
            [lyr["bq"] * inv_scale, lyr["bk"], lyr["bv"]], axis=0).reshape(3, 1, H)
        kp["layers"].append({
            "wqkv": wqkv, "bqkv": bqkv,
            "wo": lyr["wo"].astype(_ACT_DTYPE), "bo": lyr["bo"].reshape(1, H),
            "ln1_g": lyr["ln1_g"].reshape(1, H), "ln1_b": lyr["ln1_b"].reshape(1, H),
            "wi": lyr["wi"].astype(_ACT_DTYPE), "bi": lyr["bi"].reshape(1, -1),
            "wo2": lyr["wo2"].astype(_ACT_DTYPE), "bo2": lyr["bo2"].reshape(1, H),
            "ln2_g": lyr["ln2_g"].reshape(1, H), "ln2_b": lyr["ln2_b"].reshape(1, H),
        })
    return kp


# ---------------------------------------------------------------------------
if __name__ == "__main__":
    cfg = dict(vocab=100, hidden=32, heads=2, intermediate=64, layers=2,
               max_pos=32, type_vocab=2, output_size=3)
    B, S = 2, 16

    key = jax.random.PRNGKey(0)
    kparam, kid = jax.random.split(key)
    torch_like_params = init_params(kparam, cfg)
    kernel_params = prepare_params(torch_like_params, cfg)

    input_ids = jax.random.randint(kid, (B, S), 0, cfg["vocab"], dtype=jnp.int32)
    attention_mask = jnp.ones((B, S), jnp.int32)
    token_type_ids = jnp.zeros((B, S), jnp.int32)

    fwd = jax.jit(functools.partial(sentiment_forward, cfg=cfg))
    logits = fwd(kernel_params, input_ids, attention_mask, token_type_ids)
    jax.block_until_ready(logits)

    assert logits.shape == (B, cfg["output_size"])
    assert bool(jnp.all(jnp.isfinite(logits)))
    print("KERNEL_OK")
</pallas_src>

<mosaic_0001>
module attributes {stable_mosaic.version = 11 : i64} {
  func.func @_qkv_kernel(%arg0: i32, %arg1: i32, %arg2: memref<32x32xbf16, #tpu.memory_space<vmem>>, %arg3: memref<1x32x32xbf16, #tpu.memory_space<vmem>>, %arg4: memref<1x1x32xf32, #tpu.memory_space<vmem>>, %arg5: memref<1x32x32xbf16, #tpu.memory_space<vmem>>) attributes {dimension_semantics = [#tpu.dimension_semantics<parallel>, #tpu.dimension_semantics<parallel>], iteration_bounds = array<i64: 3, 1>, scalar_prefetch = 0 : i64, scratch_operands = 0 : i64, tpu.core_type = #tpu.core_type<tc>, window_params = [{transform_indices = @transform_0, window_bounds = array<i64: 32, 32>}, {transform_indices = @transform_1, window_bounds = array<i64: 1, 32, 32>}, {transform_indices = @transform_2, window_bounds = array<i64: 1, 1, 32>}, {transform_indices = @transform_3, window_bounds = array<i64: 1, 32, 32>}]} {
    %c0 = arith.constant 0 : index
    %c0_0 = arith.constant 0 : index
    %0 = vector.load %arg2[%c0, %c0_0] : memref<32x32xbf16, #tpu.memory_space<vmem>>, vector<32x32xbf16>
    %c0_1 = arith.constant 0 : index
    %c0_2 = arith.constant 0 : index
    %c0_3 = arith.constant 0 : index
    %1 = vector.load %arg3[%c0_1, %c0_2, %c0_3] : memref<1x32x32xbf16, #tpu.memory_space<vmem>>, vector<1x32x32xbf16>
    %2 = vector.shape_cast %1 : vector<1x32x32xbf16> to vector<32x32xbf16>
    %cst = arith.constant dense<0.000000e+00> : vector<32x32xf32>
    %3 = tpu.matmul %0, %2, %cst {dimension_numbers = #tpu.dot_dimension_numbers<[1], [0], [0], [1], [0, 0, 1, 1], [], []>} : vector<32x32xbf16>, vector<32x32xbf16>, vector<32x32xf32> -> vector<32x32xf32>
    %c0_4 = arith.constant 0 : index
    %c0_5 = arith.constant 0 : index
    %c0_6 = arith.constant 0 : index
    %4 = vector.load %arg4[%c0_4, %c0_5, %c0_6] : memref<1x1x32xf32, #tpu.memory_space<vmem>>, vector<1x1x32xf32>
    %5 = vector.shape_cast %4 : vector<1x1x32xf32> to vector<1x32xf32>
    %6 = vector.broadcast %5 : vector<1x32xf32> to vector<32x32xf32>
    %7 = arith.addf %3, %6 : vector<32x32xf32>
    %8 = arith.truncf %7 : vector<32x32xf32> to vector<32x32xbf16>
    %c0_7 = arith.constant 0 : index
    %c0_8 = arith.constant 0 : index
    %c0_9 = arith.constant 0 : index
    %9 = vector.load %arg5[%c0_7, %c0_8, %c0_9] : memref<1x32x32xbf16, #tpu.memory_space<vmem>>, vector<1x32x32xbf16>
    %10 = vector.shape_cast %9 : vector<1x32x32xbf16> to vector<32x32xbf16>
    %11 = vector.shape_cast %8 : vector<32x32xbf16> to vector<1x32x32xbf16>
    tpu.vector_store %arg5[%c0_7, %c0_8, %c0_9], %11 {strides = array<i32>} : memref<1x32x32xbf16, #tpu.memory_space<vmem>>, vector<1x32x32xbf16>,
    return
  }
  func.func @transform_0(%arg0: i32, %arg1: i32) -> (i32, i32) {
    %c0_i32 = arith.constant 0 : i32
    %c0_i32_0 = arith.constant 0 : i32
    return %arg1, %c0_i32 : i32, i32
  }
  func.func @transform_1(%arg0: i32, %arg1: i32) -> (i32, i32, i32) {
    %c0_i32 = arith.constant 0 : i32
    %c0_i32_0 = arith.constant 0 : i32
    %c0_i32_1 = arith.constant 0 : i32
    return %arg0, %c0_i32, %c0_i32_0 : i32, i32, i32
  }
  func.func @transform_2(%arg0: i32, %arg1: i32) -> (i32, i32, i32) {
    %c0_i32 = arith.constant 0 : i32
    %c0_i32_0 = arith.constant 0 : i32
    %c0_i32_1 = arith.constant 0 : i32
    return %arg0, %c0_i32, %c0_i32_0 : i32, i32, i32
  }
  func.func @transform_3(%arg0: i32, %arg1: i32) -> (i32, i32, i32) {
    %c0_i32 = arith.constant 0 : i32
    %c0_i32_0 = arith.constant 0 : i32
    return %arg0, %arg1, %c0_i32 : i32, i32, i32
  }
}

module attributes {stable_mosaic.version = 11 : i64} {
  func.func @_matmul_res_ln_kernel(%arg0: i32, %arg1: memref<32x32xbf16, #tpu.memory_space<vmem>>, %arg2: memref<32x32xbf16, #tpu.memory_space<vmem>>, %arg3: memref<1x32xf32, #tpu.memory_space<vmem>>, %arg4: memref<32x32xbf16, #tpu.memory_space<vmem>>, %arg5: memref<1x32xf32, #tpu.memory_space<vmem>>, %arg6: memref<1x32xf32, #tpu.memory_space<vmem>>, %arg7: memref<32x32xbf16, #tpu.memory_space<vmem>>) attributes {dimension_semantics = [#tpu.dimension_semantics<parallel>], iteration_bounds = array<i64: 1>, scalar_prefetch = 0 : i64, scratch_operands = 0 : i64, tpu.core_type = #tpu.core_type<tc>, window_params = [{transform_indices = @transform_0, window_bounds = array<i64: 32, 32>}, {pipeline_mode = #tpu.pipeline_mode<synchronous>, transform_indices = @transform_1, window_bounds = array<i64: 32, 32>}, {pipeline_mode = #tpu.pipeline_mode<synchronous>, transform_indices = @transform_2, window_bounds = array<i64: 1, 32>}, {transform_indices = @transform_3, window_bounds = array<i64: 32, 32>}, {pipeline_mode = #tpu.pipeline_mode<synchronous>, transform_indices = @transform_4, window_bounds = array<i64: 1, 32>}, {pipeline_mode = #tpu.pipeline_mode<synchronous>, transform_indices = @transform_5, window_bounds = array<i64: 1, 32>}, {transform_indices = @transform_6, window_bounds = array<i64: 32, 32>}]} {
    %c0 = arith.constant 0 : index
    %c0_0 = arith.constant 0 : index
    %0 = vector.load %arg1[%c0, %c0_0] : memref<32x32xbf16, #tpu.memory_space<vmem>>, vector<32x32xbf16>
    %c0_1 = arith.constant 0 : index
    %c0_2 = arith.constant 0 : index
    %1 = vector.load %arg2[%c0_1, %c0_2] : memref<32x32xbf16, #tpu.memory_space<vmem>>, vector<32x32xbf16>
    %cst = arith.constant dense<0.000000e+00> : vector<32x32xf32>
    %2 = tpu.matmul %0, %1, %cst {dimension_numbers = #tpu.dot_dimension_numbers<[1], [0], [0], [1], [0, 0, 1, 1], [], []>} : vector<32x32xbf16>, vector<32x32xbf16>, vector<32x32xf32> -> vector<32x32xf32>
    %c0_3 = arith.constant 0 : index
    %c0_4 = arith.constant 0 : index
    %3 = vector.load %arg3[%c0_3, %c0_4] : memref<1x32xf32, #tpu.memory_space<vmem>>, vector<1x32xf32>
    %4 = vector.broadcast %3 : vector<1x32xf32> to vector<32x32xf32>
    %5 = arith.addf %2, %4 : vector<32x32xf32>
    %c0_5 = arith.constant 0 : index
    %c0_6 = arith.constant 0 : index
    %6 = vector.load %arg4[%c0_5, %c0_6] : memref<32x32xbf16, #tpu.memory_space<vmem>>, vector<32x32xbf16>
    %7 = arith.extf %6 : vector<32x32xbf16> to vector<32x32xf32>
    %8 = arith.addf %5, %7 : vector<32x32xf32>
    %cst_7 = arith.constant dense<0.000000e+00> : vector<32xf32>
    %9 = vector.multi_reduction <add>, %8, %cst_7 [1] : vector<32x32xf32> to vector<32xf32>
    %10 = vector.shape_cast %9 : vector<32xf32> to vector<32x1xf32>
    %cst_8 = arith.constant 3.200000e+01 : f32
    %11 = vector.broadcast %cst_8 : f32 to vector<32x1xf32>
    %12 = arith.divf %10, %11 : vector<32x1xf32>
    %13 = vector.broadcast %12 : vector<32x1xf32> to vector<32x32xf32>
    %14 = arith.subf %8, %13 : vector<32x32xf32>
    %15 = arith.mulf %14, %14 : vector<32x32xf32>
    %cst_9 = arith.constant dense<0.000000e+00> : vector<32xf32>
    %16 = vector.multi_reduction <add>, %15, %cst_9 [1] : vector<32x32xf32> to vector<32xf32>
    %17 = vector.shape_cast %16 : vector<32xf32> to vector<32x1xf32>
    %cst_10 = arith.constant 3.200000e+01 : f32
    %18 = vector.broadcast %cst_10 : f32 to vector<32x1xf32>
    %19 = arith.divf %17, %18 : vector<32x1xf32>
    %20 = vector.broadcast %12 : vector<32x1xf32> to vector<32x32xf32>
    %21 = arith.subf %8, %20 : vector<32x32xf32>
    %cst_11 = arith.constant 9.99999996E-13 : f32
    %22 = vector.broadcast %cst_11 : f32 to vector<32x1xf32>
    %23 = arith.addf %19, %22 : vector<32x1xf32>
    %24 = math.rsqrt %23 : vector<32x1xf32>
    %25 = vector.broadcast %24 : vector<32x1xf32> to vector<32x32xf32>
    %26 = arith.mulf %21, %25 : vector<32x32xf32>
    %c0_12 = arith.constant 0 : index
    %c0_13 = arith.constant 0 : index
    %27 = vector.load %arg5[%c0_12, %c0_13] : memref<1x32xf32, #tpu.memory_space<vmem>>, vector<1x32xf32>
    %28 = vector.broadcast %27 : vector<1x32xf32> to vector<32x32xf32>
    %29 = arith.mulf %26, %28 : vector<32x32xf32>
    %c0_14 = arith.constant 0 : index
    %c0_15 = arith.constant 0 : index
    %30 = vector.load %arg6[%c0_14, %c0_15] : memref<1x32xf32, #tpu.memory_space<vmem>>, vector<1x32xf32>
    %31 = vector.broadcast %30 : vector<1x32xf32> to vector<32x32xf32>
    %32 = arith.addf %29, %31 : vector<32x32xf32>
    %33 = arith.truncf %32 : vector<32x32xf32> to vector<32x32xbf16>
    %c0_16 = arith.constant 0 : index
    %c0_17 = arith.constant 0 : index
    %34 = vector.load %arg7[%c0_16, %c0_17] : memref<32x32xbf16, #tpu.memory_space<vmem>>, vector<32x32xbf16>
    tpu.vector_store %arg7[%c0_16, %c0_17], %33 {strides = array<i32>} : memref<32x32xbf16, #tpu.memory_space<vmem>>, vector<32x32xbf16>,
    return
  }
  func.func @transform_0(%arg0: i32) -> (i32, i32) {
    %c0_i32 = arith.constant 0 : i32
    %c0_i32_0 = arith.constant 0 : i32
    return %arg0, %c0_i32 : i32, i32
  }
  func.func @transform_1(%arg0: i32) -> (i32, i32) {
    %c0_i32 = arith.constant 0 : i32
    %c0_i32_0 = arith.constant 0 : i32
    %c0_i32_1 = arith.constant 0 : i32
    return %c0_i32, %c0_i32_0 : i32, i32
  }
  func.func @transform_2(%arg0: i32) -> (i32, i32) {
    %c0_i32 = arith.constant 0 : i32
    %c0_i32_0 = arith.constant 0 : i32
    %c0_i32_1 = arith.constant 0 : i32
    return %c0_i32, %c0_i32_0 : i32, i32
  }
  func.func @transform_3(%arg0: i32) -> (i32, i32) {
    %c0_i32 = arith.constant 0 : i32
    %c0_i32_0 = arith.constant 0 : i32
    return %arg0, %c0_i32 : i32, i32
  }
  func.func @transform_4(%arg0: i32) -> (i32, i32) {
    %c0_i32 = arith.constant 0 : i32
    %c0_i32_0 = arith.constant 0 : i32
    %c0_i32_1 = arith.constant 0 : i32
    return %c0_i32, %c0_i32_0 : i32, i32
  }
  func.func @transform_5(%arg0: i32) -> (i32, i32) {
    %c0_i32 = arith.constant 0 : i32
    %c0_i32_0 = arith.constant 0 : i32
    %c0_i32_1 = arith.constant 0 : i32
    return %c0_i32, %c0_i32_0 : i32, i32
  }
  func.func @transform_6(%arg0: i32) -> (i32, i32) {
    %c0_i32 = arith.constant 0 : i32
    %c0_i32_0 = arith.constant 0 : i32
    return %arg0, %c0_i32 : i32, i32
  }
}

module attributes {stable_mosaic.version = 11 : i64} {
  func.func @_linear_act_kernel(%arg0: i32, %arg1: i32, %arg2: memref<32x32xbf16, #tpu.memory_space<vmem>>, %arg3: memref<32x64xbf16, #tpu.memory_space<vmem>>, %arg4: memref<1x64xf32, #tpu.memory_space<vmem>>, %arg5: memref<32x64xbf16, #tpu.memory_space<vmem>>) attributes {dimension_semantics = [#tpu.dimension_semantics<parallel>, #tpu.dimension_semantics<parallel>], iteration_bounds = array<i64: 1, 1>, scalar_prefetch = 0 : i64, scratch_operands = 0 : i64, tpu.core_type = #tpu.core_type<tc>, window_params = [{transform_indices = @transform_0, window_bounds = array<i64: 32, 32>}, {transform_indices = @transform_1, window_bounds = array<i64: 32, 64>}, {transform_indices = @transform_2, window_bounds = array<i64: 1, 64>}, {transform_indices = @transform_3, window_bounds = array<i64: 32, 64>}]} {
    %c0 = arith.constant 0 : index
    %c0_0 = arith.constant 0 : index
    %0 = vector.load %arg2[%c0, %c0_0] : memref<32x32xbf16, #tpu.memory_space<vmem>>, vector<32x32xbf16>
    %c0_1 = arith.constant 0 : index
    %c0_2 = arith.constant 0 : index
    %1 = vector.load %arg3[%c0_1, %c0_2] : memref<32x64xbf16, #tpu.memory_space<vmem>>, vector<32x64xbf16>
    %cst = arith.constant dense<0.000000e+00> : vector<32x64xf32>
    %2 = tpu.matmul %0, %1, %cst {dimension_numbers = #tpu.dot_dimension_numbers<[1], [0], [0], [1], [0, 0, 1, 1], [], []>} : vector<32x32xbf16>, vector<32x64xbf16>, vector<32x64xf32> -> vector<32x64xf32>
    %c0_3 = arith.constant 0 : index
    %c0_4 = arith.constant 0 : index
    %3 = vector.load %arg4[%c0_3, %c0_4] : memref<1x64xf32, #tpu.memory_space<vmem>>, vector<1x64xf32>
    %4 = vector.broadcast %3 : vector<1x64xf32> to vector<32x64xf32>
    %5 = arith.addf %2, %4 : vector<32x64xf32>
    %6 = arith.mulf %5, %5 : vector<32x64xf32>
    %7 = arith.mulf %5, %6 : vector<32x64xf32>
    %cst_5 = arith.constant 4.471500e-02 : f32
    %8 = vector.broadcast %cst_5 : f32 to vector<32x64xf32>
    %9 = arith.mulf %8, %7 : vector<32x64xf32>
    %10 = arith.addf %5, %9 : vector<32x64xf32>
    %cst_6 = arith.constant 0.797884583 : f32
    %11 = vector.broadcast %cst_6 : f32 to vector<32x64xf32>
    %12 = arith.mulf %11, %10 : vector<32x64xf32>
    %13 = math.tanh %12 : vector<32x64xf32>
    %cst_7 = arith.constant 1.000000e+00 : f32
    %14 = vector.broadcast %cst_7 : f32 to vector<32x64xf32>
    %15 = arith.addf %14, %13 : vector<32x64xf32>
    %cst_8 = arith.constant 5.000000e-01 : f32
    %16 = vector.broadcast %cst_8 : f32 to vector<32x64xf32>
    %17 = arith.mulf %16, %15 : vector<32x64xf32>
    %18 = arith.mulf %5, %17 : vector<32x64xf32>
    %19 = arith.truncf %18 : vector<32x64xf32> to vector<32x64xbf16>
    %c0_9 = arith.constant 0 : index
    %c0_10 = arith.constant 0 : index
    %20 = vector.load %arg5[%c0_9, %c0_10] : memref<32x64xbf16, #tpu.memory_space<vmem>>, vector<32x64xbf16>
    tpu.vector_store %arg5[%c0_9, %c0_10], %19 {strides = array<i32>} : memref<32x64xbf16, #tpu.memory_space<vmem>>, vector<32x64xbf16>,
    return
  }
  func.func @transform_0(%arg0: i32, %arg1: i32) -> (i32, i32) {
    %c0_i32 = arith.constant 0 : i32
    %c0_i32_0 = arith.constant 0 : i32
    return %arg1, %c0_i32 : i32, i32
  }
  func.func @transform_1(%arg0: i32, %arg1: i32) -> (i32, i32) {
    %c0_i32 = arith.constant 0 : i32
    %c0_i32_0 = arith.constant 0 : i32
    return %c0_i32, %arg0 : i32, i32
  }
  func.func @transform_2(%arg0: i32, %arg1: i32) -> (i32, i32) {
    %c0_i32 = arith.constant 0 : i32
    %c0_i32_0 = arith.constant 0 : i32
    return %c0_i32, %arg0 : i32, i32
  }
  func.func @transform_3(%arg0: i32, %arg1: i32) -> (i32, i32) {
    %c0_i32 = arith.constant 0 : i32
    return %arg1, %arg0 : i32, i32
  }
}

module attributes {stable_mosaic.version = 11 : i64} {
  func.func @_flash_attn_kernel(%arg0: i32, %arg1: i32, %arg2: i32, %arg3: memref<1x16x32xbf16, #tpu.memory_space<vmem>>, %arg4: memref<1x16x32xbf16, #tpu.memory_space<vmem>>, %arg5: memref<1x16x32xbf16, #tpu.memory_space<vmem>>, %arg6: memref<1x1x16xf32, #tpu.memory_space<vmem>>, %arg7: memref<16x32xbf16, #tpu.memory_space<vmem>>, %arg8: memref<2x16x1xf32, #tpu.memory_space<vmem>>, %arg9: memref<2x16x1xf32, #tpu.memory_space<vmem>>, %arg10: memref<2x16x16xf32, #tpu.memory_space<vmem>>) attributes {dimension_semantics = [#tpu.dimension_semantics<parallel>, #tpu.dimension_semantics<parallel>, #tpu.dimension_semantics<arbitrary>], iteration_bounds = array<i64: 2, 1, 1>, scalar_prefetch = 0 : i64, scratch_operands = 3 : i64, tpu.core_type = #tpu.core_type<tc>, window_params = [{transform_indices = @transform_0, window_bounds = array<i64: 1, 16, 32>}, {transform_indices = @transform_1, window_bounds = array<i64: 1, 16, 32>}, {transform_indices = @transform_2, window_bounds = array<i64: 1, 16, 32>}, {transform_indices = @transform_3, window_bounds = array<i64: 1, 1, 16>}, {transform_indices = @transform_4, window_bounds = array<i64: 16, 32>}]} {
    %c0_i32 = arith.constant 0 : i32
    %0 = arith.cmpi eq, %arg2, %c0_i32 : i32
    %1 = arith.extui %0 : i1 to i32
    %c0_i32_0 = arith.constant 0 : i32
    %2 = arith.cmpi ne, %1, %c0_i32_0 : i32
    scf.if %2 {
      %cst_64 = arith.constant -1.000000e+30 : f32
      %90 = vector.broadcast %cst_64 : f32 to vector<2x16x1xf32>
      %c0_65 = arith.constant 0 : index
      %c0_66 = arith.constant 0 : index
      %c0_67 = arith.constant 0 : index
      %91 = vector.load %arg8[%c0_65, %c0_66, %c0_67] : memref<2x16x1xf32, #tpu.memory_space<vmem>>, vector<2x16x1xf32>
      tpu.vector_store %arg8[%c0_65, %c0_66, %c0_67], %90 {strides = array<i32>} : memref<2x16x1xf32, #tpu.memory_space<vmem>>, vector<2x16x1xf32>,
      %cst_68 = arith.constant 0.000000e+00 : f32
      %92 = vector.broadcast %cst_68 : f32 to vector<2x16x1xf32>
      %c0_69 = arith.constant 0 : index
      %c0_70 = arith.constant 0 : index
      %c0_71 = arith.constant 0 : index
      %93 = vector.load %arg9[%c0_69, %c0_70, %c0_71] : memref<2x16x1xf32, #tpu.memory_space<vmem>>, vector<2x16x1xf32>
      tpu.vector_store %arg9[%c0_69, %c0_70, %c0_71], %92 {strides = array<i32>} : memref<2x16x1xf32, #tpu.memory_space<vmem>>, vector<2x16x1xf32>,
      %cst_72 = arith.constant 0.000000e+00 : f32
      %94 = vector.broadcast %cst_72 : f32 to vector<2x16x16xf32>
      %c0_73 = arith.constant 0 : index
      %c0_74 = arith.constant 0 : index
      %c0_75 = arith.constant 0 : index
      %95 = vector.load %arg10[%c0_73, %c0_74, %c0_75] : memref<2x16x16xf32, #tpu.memory_space<vmem>>, vector<2x16x16xf32>
      tpu.vector_store %arg10[%c0_73, %c0_74, %c0_75], %94 {strides = array<i32>} : memref<2x16x16xf32, #tpu.memory_space<vmem>>, vector<2x16x16xf32>,
    } else {
    }
    %c0 = arith.constant 0 : index
    %c0_1 = arith.constant 0 : index
    %c0_2 = arith.constant 0 : index
    %3 = vector.load %arg6[%c0, %c0_1, %c0_2] : memref<1x1x16xf32, #tpu.memory_space<vmem>>, vector<1x1x16xf32>
    %4 = vector.shape_cast %3 : vector<1x1x16xf32> to vector<1x16xf32>
    %c0_3 = arith.constant 0 : index
    %c0_4 = arith.constant 0 : index
    %c0_5 = arith.constant 0 : index
    %5 = vector.load %arg3[%c0_3, %c0_4, %c0_5] : memref<1x16x32xbf16, #tpu.memory_space<vmem>>, vector<1x16x16xbf16>
    %6 = vector.shape_cast %5 : vector<1x16x16xbf16> to vector<16x16xbf16>
    %c0_6 = arith.constant 0 : index
    %c0_7 = arith.constant 0 : index
    %c0_8 = arith.constant 0 : index
    %7 = vector.load %arg4[%c0_6, %c0_7, %c0_8] : memref<1x16x32xbf16, #tpu.memory_space<vmem>>, vector<1x16x16xbf16>
    %8 = vector.shape_cast %7 : vector<1x16x16xbf16> to vector<16x16xbf16>
    %cst = arith.constant dense<0.000000e+00> : vector<16x16xf32>
    %9 = tpu.matmul %6, %8, %cst {dimension_numbers = #tpu.dot_dimension_numbers<[1], [1], [0], [0], [0, 0, 1, 0], [], []>} : vector<16x16xbf16>, vector<16x16xbf16>, vector<16x16xf32> -> vector<16x16xf32>
    %10 = vector.broadcast %4 : vector<1x16xf32> to vector<16x16xf32>
    %11 = arith.addf %9, %10 : vector<16x16xf32>
    %c0_9 = arith.constant 0 : index
    %c0_10 = arith.constant 0 : index
    %c0_11 = arith.constant 0 : index
    %12 = vector.load %arg8[%c0_9, %c0_10, %c0_11] : memref<2x16x1xf32, #tpu.memory_space<vmem>>, vector<1x16x1xf32>
    %13 = vector.shape_cast %12 : vector<1x16x1xf32> to vector<16x1xf32>
    %cst_12 = arith.constant dense<0xFF800000> : vector<16xf32>
    %14 = vector.multi_reduction <maximumf>, %11, %cst_12 [1] : vector<16x16xf32> to vector<16xf32>
    %15 = vector.shape_cast %14 : vector<16xf32> to vector<16x1xf32>
    %16 = arith.maximumf %13, %15 : vector<16x1xf32>
    %17 = arith.subf %13, %16 : vector<16x1xf32>
    %18 = math.exp %17 : vector<16x1xf32>
    %19 = vector.broadcast %16 : vector<16x1xf32> to vector<16x16xf32>
    %20 = arith.subf %11, %19 : vector<16x16xf32>
    %21 = math.exp %20 : vector<16x16xf32>
    %c0_13 = arith.constant 0 : index
    %c0_14 = arith.constant 0 : index
    %c0_15 = arith.constant 0 : index
    %22 = vector.load %arg9[%c0_13, %c0_14, %c0_15] : memref<2x16x1xf32, #tpu.memory_space<vmem>>, vector<1x16x1xf32>
    %23 = vector.shape_cast %22 : vector<1x16x1xf32> to vector<16x1xf32>
    %24 = arith.mulf %18, %23 : vector<16x1xf32>
    %cst_16 = arith.constant dense<0.000000e+00> : vector<16xf32>
    %25 = vector.multi_reduction <add>, %21, %cst_16 [1] : vector<16x16xf32> to vector<16xf32>
    %26 = vector.shape_cast %25 : vector<16xf32> to vector<16x1xf32>
    %27 = arith.addf %24, %26 : vector<16x1xf32>
    %c0_17 = arith.constant 0 : index
    %c0_18 = arith.constant 0 : index
    %c0_19 = arith.constant 0 : index
    %28 = vector.load %arg9[%c0_17, %c0_18, %c0_19] : memref<2x16x1xf32, #tpu.memory_space<vmem>>, vector<1x16x1xf32>
    %29 = vector.shape_cast %28 : vector<1x16x1xf32> to vector<16x1xf32>
    %30 = vector.shape_cast %27 : vector<16x1xf32> to vector<1x16x1xf32>
    tpu.vector_store %arg9[%c0_17, %c0_18, %c0_19], %30 {strides = array<i32>} : memref<2x16x1xf32, #tpu.memory_space<vmem>>, vector<1x16x1xf32>,
    %c0_20 = arith.constant 0 : index
    %c0_21 = arith.constant 0 : index
    %c0_22 = arith.constant 0 : index
    %31 = vector.load %arg10[%c0_20, %c0_21, %c0_22] : memref<2x16x16xf32, #tpu.memory_space<vmem>>, vector<1x16x16xf32>
    %32 = vector.shape_cast %31 : vector<1x16x16xf32> to vector<16x16xf32>
    %33 = vector.broadcast %18 : vector<16x1xf32> to vector<16x16xf32>
    %34 = arith.mulf %33, %32 : vector<16x16xf32>
    %35 = arith.truncf %21 : vector<16x16xf32> to vector<16x16xbf16>
    %c0_23 = arith.constant 0 : index
    %c0_24 = arith.constant 0 : index
    %c0_25 = arith.constant 0 : index
    %36 = vector.load %arg5[%c0_23, %c0_24, %c0_25] : memref<1x16x32xbf16, #tpu.memory_space<vmem>>, vector<1x16x16xbf16>
    %37 = vector.shape_cast %36 : vector<1x16x16xbf16> to vector<16x16xbf16>
    %cst_26 = arith.constant dense<0.000000e+00> : vector<16x16xf32>
    %38 = tpu.matmul %35, %37, %cst_26 {dimension_numbers = #tpu.dot_dimension_numbers<[1], [0], [0], [1], [0, 0, 1, 1], [], []>} : vector<16x16xbf16>, vector<16x16xbf16>, vector<16x16xf32> -> vector<16x16xf32>
    %39 = arith.addf %34, %38 : vector<16x16xf32>
    %c0_27 = arith.constant 0 : index
    %c0_28 = arith.constant 0 : index
    %c0_29 = arith.constant 0 : index
    %40 = vector.load %arg10[%c0_27, %c0_28, %c0_29] : memref<2x16x16xf32, #tpu.memory_space<vmem>>, vector<1x16x16xf32>
    %41 = vector.shape_cast %40 : vector<1x16x16xf32> to vector<16x16xf32>
    %42 = vector.shape_cast %39 : vector<16x16xf32> to vector<1x16x16xf32>
    tpu.vector_store %arg10[%c0_27, %c0_28, %c0_29], %42 {strides = array<i32>} : memref<2x16x16xf32, #tpu.memory_space<vmem>>, vector<1x16x16xf32>,
    %c0_30 = arith.constant 0 : index
    %c0_31 = arith.constant 0 : index
    %c0_32 = arith.constant 0 : index
    %43 = vector.load %arg8[%c0_30, %c0_31, %c0_32] : memref<2x16x1xf32, #tpu.memory_space<vmem>>, vector<1x16x1xf32>
    %44 = vector.shape_cast %43 : vector<1x16x1xf32> to vector<16x1xf32>
    %45 = vector.shape_cast %16 : vector<16x1xf32> to vector<1x16x1xf32>
    tpu.vector_store %arg8[%c0_30, %c0_31, %c0_32], %45 {strides = array<i32>} : memref<2x16x1xf32, #tpu.memory_space<vmem>>, vector<1x16x1xf32>,
    %c0_33 = arith.constant 0 : index
    %c0_34 = arith.constant 0 : index
    %c16 = arith.constant 16 : index
    %46 = vector.load %arg3[%c0_33, %c0_34, %c16] : memref<1x16x32xbf16, #tpu.memory_space<vmem>>, vector<1x16x16xbf16>
    %47 = vector.shape_cast %46 : vector<1x16x16xbf16> to vector<16x16xbf16>
    %c0_35 = arith.constant 0 : index
    %c0_36 = arith.constant 0 : index
    %c16_37 = arith.constant 16 : index
    %48 = vector.load %arg4[%c0_35, %c0_36, %c16_37] : memref<1x16x32xbf16, #tpu.memory_space<vmem>>, vector<1x16x16xbf16>
    %49 = vector.shape_cast %48 : vector<1x16x16xbf16> to vector<16x16xbf16>
    %cst_38 = arith.constant dense<0.000000e+00> : vector<16x16xf32>
    %50 = tpu.matmul %47, %49, %cst_38 {dimension_numbers = #tpu.dot_dimension_numbers<[1], [1], [0], [0], [0, 0, 1, 0], [], []>} : vector<16x16xbf16>, vector<16x16xbf16>, vector<16x16xf32> -> vector<16x16xf32>
    %51 = vector.broadcast %4 : vector<1x16xf32> to vector<16x16xf32>
    %52 = arith.addf %50, %51 : vector<16x16xf32>
    %c1 = arith.constant 1 : index
    %c0_39 = arith.constant 0 : index
    %c0_40 = arith.constant 0 : index
    %53 = vector.load %arg8[%c1, %c0_39, %c0_40] : memref<2x16x1xf32, #tpu.memory_space<vmem>>, vector<1x16x1xf32>
    %54 = vector.shape_cast %53 : vector<1x16x1xf32> to vector<16x1xf32>
    %cst_41 = arith.constant dense<0xFF800000> : vector<16xf32>
    %55 = vector.multi_reduction <maximumf>, %52, %cst_41 [1] : vector<16x16xf32> to vector<16xf32>
    %56 = vector.shape_cast %55 : vector<16xf32> to vector<16x1xf32>
    %57 = arith.maximumf %54, %56 : vector<16x1xf32>
    %58 = arith.subf %54, %57 : vector<16x1xf32>
    %59 = math.exp %58 : vector<16x1xf32>
    %60 = vector.broadcast %57 : vector<16x1xf32> to vector<16x16xf32>
    %61 = arith.subf %52, %60 : vector<16x16xf32>
    %62 = math.exp %61 : vector<16x16xf32>
    %c1_42 = arith.constant 1 : index
    %c0_43 = arith.constant 0 : index
    %c0_44 = arith.constant 0 : index
    %63 = vector.load %arg9[%c1_42, %c0_43, %c0_44] : memref<2x16x1xf32, #tpu.memory_space<vmem>>, vector<1x16x1xf32>
    %64 = vector.shape_cast %63 : vector<1x16x1xf32> to vector<16x1xf32>
    %65 = arith.mulf %59, %64 : vector<16x1xf32>
    %cst_45 = arith.constant dense<0.000000e+00> : vector<16xf32>
    %66 = vector.multi_reduction <add>, %62, %cst_45 [1] : vector<16x16xf32> to vector<16xf32>
    %67 = vector.shape_cast %66 : vector<16xf32> to vector<16x1xf32>
    %68 = arith.addf %65, %67 : vector<16x1xf32>
    %c1_46 = arith.constant 1 : index
    %c0_47 = arith.constant 0 : index
    %c0_48 = arith.constant 0 : index
    %69 = vector.load %arg9[%c1_46, %c0_47, %c0_48] : memref<2x16x1xf32, #tpu.memory_space<vmem>>, vector<1x16x1xf32>
    %70 = vector.shape_cast %69 : vector<1x16x1xf32> to vector<16x1xf32>
    %71 = vector.shape_cast %68 : vector<16x1xf32> to vector<1x16x1xf32>
    tpu.vector_store %arg9[%c1_46, %c0_47, %c0_48], %71 {strides = array<i32>} : memref<2x16x1xf32, #tpu.memory_space<vmem>>, vector<1x16x1xf32>,
    %c1_49 = arith.constant 1 : index
    %c0_50 = arith.constant 0 : index
    %c0_51 = arith.constant 0 : index
    %72 = vector.load %arg10[%c1_49, %c0_50, %c0_51] : memref<2x16x16xf32, #tpu.memory_space<vmem>>, vector<1x16x16xf32>
    %73 = vector.shape_cast %72 : vector<1x16x16xf32> to vector<16x16xf32>
    %74 = vector.broadcast %59 : vector<16x1xf32> to vector<16x16xf32>
    %75 = arith.mulf %74, %73 : vector<16x16xf32>
    %76 = arith.truncf %62 : vector<16x16xf32> to vector<16x16xbf16>
    %c0_52 = arith.constant 0 : index
    %c0_53 = arith.constant 0 : index
    %c16_54 = arith.constant 16 : index
    %77 = vector.load %arg5[%c0_52, %c0_53, %c16_54] : memref<1x16x32xbf16, #tpu.memory_space<vmem>>, vector<1x16x16xbf16>
    %78 = vector.shape_cast %77 : vector<1x16x16xbf16> to vector<16x16xbf16>
    %cst_55 = arith.constant dense<0.000000e+00> : vector<16x16xf32>
    %79 = tpu.matmul %76, %78, %cst_55 {dimension_numbers = #tpu.dot_dimension_numbers<[1], [0], [0], [1], [0, 0, 1, 1], [], []>} : vector<16x16xbf16>, vector<16x16xbf16>, vector<16x16xf32> -> vector<16x16xf32>
    %80 = arith.addf %75, %79 : vector<16x16xf32>
    %c1_56 = arith.constant 1 : index
    %c0_57 = arith.constant 0 : index
    %c0_58 = arith.constant 0 : index
    %81 = vector.load %arg10[%c1_56, %c0_57, %c0_58] : memref<2x16x16xf32, #tpu.memory_space<vmem>>, vector<1x16x16xf32>
    %82 = vector.shape_cast %81 : vector<1x16x16xf32> to vector<16x16xf32>
    %83 = vector.shape_cast %80 : vector<16x16xf32> to vector<1x16x16xf32>
    tpu.vector_store %arg10[%c1_56, %c0_57, %c0_58], %83 {strides = array<i32>} : memref<2x16x16xf32, #tpu.memory_space<vmem>>, vector<1x16x16xf32>,
    %c1_59 = arith.constant 1 : index
    %c0_60 = arith.constant 0 : index
    %c0_61 = arith.constant 0 : index
    %84 = vector.load %arg8[%c1_59, %c0_60, %c0_61] : memref<2x16x1xf32, #tpu.memory_space<vmem>>, vector<1x16x1xf32>
    %85 = vector.shape_cast %84 : vector<1x16x1xf32> to vector<16x1xf32>
    %86 = vector.shape_cast %57 : vector<16x1xf32> to vector<1x16x1xf32>
    tpu.vector_store %arg8[%c1_59, %c0_60, %c0_61], %86 {strides = array<i32>} : memref<2x16x1xf32, #tpu.memory_space<vmem>>, vector<1x16x1xf32>,
    %c0_i32_62 = arith.constant 0 : i32
    %87 = arith.cmpi eq, %arg2, %c0_i32_62 : i32
    %88 = arith.extui %87 : i1 to i32
    %c0_i32_63 = arith.constant 0 : i32
    %89 = arith.cmpi ne, %88, %c0_i32_63 : i32
    scf.if %89 {
      %c0_64 = arith.constant 0 : index
      %c0_65 = arith.constant 0 : index
      %c0_66 = arith.constant 0 : index
      %90 = vector.load %arg9[%c0_64, %c0_65, %c0_66] : memref<2x16x1xf32, #tpu.memory_space<vmem>>, vector<1x16x1xf32>
      %91 = vector.shape_cast %90 : vector<1x16x1xf32> to vector<16x1xf32>
      %92 = tpu.reciprocal %91 {approx = true} : vector<16x1xf32> -> vector<16x1xf32>
      %c0_67 = arith.constant 0 : index
      %c0_68 = arith.constant 0 : index
      %c0_69 = arith.constant 0 : index
      %93 = vector.load %arg10[%c0_67, %c0_68, %c0_69] : memref<2x16x16xf32, #tpu.memory_space<vmem>>, vector<1x16x16xf32>
      %94 = vector.shape_cast %93 : vector<1x16x16xf32> to vector<16x16xf32>
      %95 = vector.broadcast %92 : vector<16x1xf32> to vector<16x16xf32>
      %96 = arith.mulf %94, %95 : vector<16x16xf32>
      %97 = arith.truncf %96 : vector<16x16xf32> to vector<16x16xbf16>
      %c0_70 = arith.constant 0 : index
      %c0_71 = arith.constant 0 : index
      %98 = vector.load %arg7[%c0_70, %c0_71] : memref<16x32xbf16, #tpu.memory_space<vmem>>, vector<16x16xbf16>
      tpu.vector_store %arg7[%c0_70, %c0_71], %97 {strides = array<i32>} : memref<16x32xbf16, #tpu.memory_space<vmem>>, vector<16x16xbf16>,
      %c1_72 = arith.constant 1 : index
      %c0_73 = arith.constant 0 : index
      %c0_74 = arith.constant 0 : index
      %99 = vector.load %arg9[%c1_72, %c0_73, %c0_74] : memref<2x16x1xf32, #tpu.memory_space<vmem>>, vector<1x16x1xf32>
      %100 = vector.shape_cast %99 : vector<1x16x1xf32> to vector<16x1xf32>
      %101 = tpu.reciprocal %100 {approx = true} : vector<16x1xf32> -> vector<16x1xf32>
      %c1_75 = arith.constant 1 : index
      %c0_76 = arith.constant 0 : index
      %c0_77 = arith.constant 0 : index
      %102 = vector.load %arg10[%c1_75, %c0_76, %c0_77] : memref<2x16x16xf32, #tpu.memory_space<vmem>>, vector<1x16x16xf32>
      %103 = vector.shape_cast %102 : vector<1x16x16xf32> to vector<16x16xf32>
      %104 = vector.broadcast %101 : vector<16x1xf32> to vector<16x16xf32>
      %105 = arith.mulf %103, %104 : vector<16x16xf32>
      %106 = arith.truncf %105 : vector<16x16xf32> to vector<16x16xbf16>
      %c0_78 = arith.constant 0 : index
      %c16_79 = arith.constant 16 : index
      %107 = vector.load %arg7[%c0_78, %c16_79] : memref<16x32xbf16, #tpu.memory_space<vmem>>, vector<16x16xbf16>
      tpu.vector_store %arg7[%c0_78, %c16_79], %106 {strides = array<i32>} : memref<16x32xbf16, #tpu.memory_space<vmem>>, vector<16x16xbf16>,
    } else {
    }
    return
  }
  func.func @transform_0(%arg0: i32, %arg1: i32, %arg2: i32) -> (i32, i32, i32) {
    %c1_i32 = arith.constant 1 : i32
    %0 = arith.muli %arg0, %c1_i32 : i32
    %1 = arith.addi %0, %arg1 : i32
    %c0_i32 = arith.constant 0 : i32
    %c0_i32_0 = arith.constant 0 : i32
    %c0_i32_1 = arith.constant 0 : i32
    return %c0_i32, %1, %c0_i32_0 : i32, i32, i32
  }
  func.func @transform_1(%arg0: i32, %arg1: i32, %arg2: i32) -> (i32, i32, i32) {
    %c1_i32 = arith.constant 1 : i32
    %0 = arith.muli %arg0, %c1_i32 : i32
    %1 = arith.addi %0, %arg2 : i32
    %c1_i32_0 = arith.constant 1 : i32
    %c0_i32 = arith.constant 0 : i32
    %c0_i32_1 = arith.constant 0 : i32
    return %c1_i32_0, %1, %c0_i32 : i32, i32, i32
  }
  func.func @transform_2(%arg0: i32, %arg1: i32, %arg2: i32) -> (i32, i32, i32) {
    %c1_i32 = arith.constant 1 : i32
    %0 = arith.muli %arg0, %c1_i32 : i32
    %1 = arith.addi %0, %arg2 : i32
    %c2_i32 = arith.constant 2 : i32
    %c0_i32 = arith.constant 0 : i32
    %c0_i32_0 = arith.constant 0 : i32
    return %c2_i32, %1, %c0_i32 : i32, i32, i32
  }
  func.func @transform_3(%arg0: i32, %arg1: i32, %arg2: i32) -> (i32, i32, i32) {
    %c0_i32 = arith.constant 0 : i32
    %c0_i32_0 = arith.constant 0 : i32
    return %arg0, %c0_i32, %arg2 : i32, i32, i32
  }
  func.func @transform_4(%arg0: i32, %arg1: i32, %arg2: i32) -> (i32, i32) {
    %c1_i32 = arith.constant 1 : i32
    %0 = arith.muli %arg0, %c1_i32 : i32
    %1 = arith.addi %0, %arg1 : i32
    %c0_i32 = arith.constant 0 : i32
    %c0_i32_0 = arith.constant 0 : i32
    return %1, %c0_i32 : i32, i32
  }
}

module attributes {stable_mosaic.version = 11 : i64} {
  func.func @_matmul_res_ln_kernel(%arg0: i32, %arg1: memref<32x64xbf16, #tpu.memory_space<vmem>>, %arg2: memref<64x32xbf16, #tpu.memory_space<vmem>>, %arg3: memref<1x32xf32, #tpu.memory_space<vmem>>, %arg4: memref<32x32xbf16, #tpu.memory_space<vmem>>, %arg5: memref<1x32xf32, #tpu.memory_space<vmem>>, %arg6: memref<1x32xf32, #tpu.memory_space<vmem>>, %arg7: memref<32x32xbf16, #tpu.memory_space<vmem>>) attributes {dimension_semantics = [#tpu.dimension_semantics<parallel>], iteration_bounds = array<i64: 1>, scalar_prefetch = 0 : i64, scratch_operands = 0 : i64, tpu.core_type = #tpu.core_type<tc>, window_params = [{transform_indices = @transform_0, window_bounds = array<i64: 32, 64>}, {pipeline_mode = #tpu.pipeline_mode<synchronous>, transform_indices = @transform_1, window_bounds = array<i64: 64, 32>}, {pipeline_mode = #tpu.pipeline_mode<synchronous>, transform_indices = @transform_2, window_bounds = array<i64: 1, 32>}, {transform_indices = @transform_3, window_bounds = array<i64: 32, 32>}, {pipeline_mode = #tpu.pipeline_mode<synchronous>, transform_indices = @transform_4, window_bounds = array<i64: 1, 32>}, {pipeline_mode = #tpu.pipeline_mode<synchronous>, transform_indices = @transform_5, window_bounds = array<i64: 1, 32>}, {transform_indices = @transform_6, window_bounds = array<i64: 32, 32>}]} {
    %c0 = arith.constant 0 : index
    %c0_0 = arith.constant 0 : index
    %0 = vector.load %arg1[%c0, %c0_0] : memref<32x64xbf16, #tpu.memory_space<vmem>>, vector<32x64xbf16>
    %c0_1 = arith.constant 0 : index
    %c0_2 = arith.constant 0 : index
    %1 = vector.load %arg2[%c0_1, %c0_2] : memref<64x32xbf16, #tpu.memory_space<vmem>>, vector<64x32xbf16>
    %cst = arith.constant dense<0.000000e+00> : vector<32x32xf32>
    %2 = tpu.matmul %0, %1, %cst {dimension_numbers = #tpu.dot_dimension_numbers<[1], [0], [0], [1], [0, 0, 1, 1], [], []>} : vector<32x64xbf16>, vector<64x32xbf16>, vector<32x32xf32> -> vector<32x32xf32>
    %c0_3 = arith.constant 0 : index
    %c0_4 = arith.constant 0 : index
    %3 = vector.load %arg3[%c0_3, %c0_4] : memref<1x32xf32, #tpu.memory_space<vmem>>, vector<1x32xf32>
    %4 = vector.broadcast %3 : vector<1x32xf32> to vector<32x32xf32>
    %5 = arith.addf %2, %4 : vector<32x32xf32>
    %c0_5 = arith.constant 0 : index
    %c0_6 = arith.constant 0 : index
    %6 = vector.load %arg4[%c0_5, %c0_6] : memref<32x32xbf16, #tpu.memory_space<vmem>>, vector<32x32xbf16>
    %7 = arith.extf %6 : vector<32x32xbf16> to vector<32x32xf32>
    %8 = arith.addf %5, %7 : vector<32x32xf32>
    %cst_7 = arith.constant dense<0.000000e+00> : vector<32xf32>
    %9 = vector.multi_reduction <add>, %8, %cst_7 [1] : vector<32x32xf32> to vector<32xf32>
    %10 = vector.shape_cast %9 : vector<32xf32> to vector<32x1xf32>
    %cst_8 = arith.constant 3.200000e+01 : f32
    %11 = vector.broadcast %cst_8 : f32 to vector<32x1xf32>
    %12 = arith.divf %10, %11 : vector<32x1xf32>
    %13 = vector.broadcast %12 : vector<32x1xf32> to vector<32x32xf32>
    %14 = arith.subf %8, %13 : vector<32x32xf32>
    %15 = arith.mulf %14, %14 : vector<32x32xf32>
    %cst_9 = arith.constant dense<0.000000e+00> : vector<32xf32>
    %16 = vector.multi_reduction <add>, %15, %cst_9 [1] : vector<32x32xf32> to vector<32xf32>
    %17 = vector.shape_cast %16 : vector<32xf32> to vector<32x1xf32>
    %cst_10 = arith.constant 3.200000e+01 : f32
    %18 = vector.broadcast %cst_10 : f32 to vector<32x1xf32>
    %19 = arith.divf %17, %18 : vector<32x1xf32>
    %20 = vector.broadcast %12 : vector<32x1xf32> to vector<32x32xf32>
    %21 = arith.subf %8, %20 : vector<32x32xf32>
    %cst_11 = arith.constant 9.99999996E-13 : f32
    %22 = vector.broadcast %cst_11 : f32 to vector<32x1xf32>
    %23 = arith.addf %19, %22 : vector<32x1xf32>
    %24 = math.rsqrt %23 : vector<32x1xf32>
    %25 = vector.broadcast %24 : vector<32x1xf32> to vector<32x32xf32>
    %26 = arith.mulf %21, %25 : vector<32x32xf32>
    %c0_12 = arith.constant 0 : index
    %c0_13 = arith.constant 0 : index
    %27 = vector.load %arg5[%c0_12, %c0_13] : memref<1x32xf32, #tpu.memory_space<vmem>>, vector<1x32xf32>
    %28 = vector.broadcast %27 : vector<1x32xf32> to vector<32x32xf32>
    %29 = arith.mulf %26, %28 : vector<32x32xf32>
    %c0_14 = arith.constant 0 : index
    %c0_15 = arith.constant 0 : index
    %30 = vector.load %arg6[%c0_14, %c0_15] : memref<1x32xf32, #tpu.memory_space<vmem>>, vector<1x32xf32>
    %31 = vector.broadcast %30 : vector<1x32xf32> to vector<32x32xf32>
    %32 = arith.addf %29, %31 : vector<32x32xf32>
    %33 = arith.truncf %32 : vector<32x32xf32> to vector<32x32xbf16>
    %c0_16 = arith.constant 0 : index
    %c0_17 = arith.constant 0 : index
    %34 = vector.load %arg7[%c0_16, %c0_17] : memref<32x32xbf16, #tpu.memory_space<vmem>>, vector<32x32xbf16>
    tpu.vector_store %arg7[%c0_16, %c0_17], %33 {strides = array<i32>} : memref<32x32xbf16, #tpu.memory_space<vmem>>, vector<32x32xbf16>,
    return
  }
  func.func @transform_0(%arg0: i32) -> (i32, i32) {
    %c0_i32 = arith.constant 0 : i32
    %c0_i32_0 = arith.constant 0 : i32
    return %arg0, %c0_i32 : i32, i32
  }
  func.func @transform_1(%arg0: i32) -> (i32, i32) {
    %c0_i32 = arith.constant 0 : i32
    %c0_i32_0 = arith.constant 0 : i32
    %c0_i32_1 = arith.constant 0 : i32
    return %c0_i32, %c0_i32_0 : i32, i32
  }
  func.func @transform_2(%arg0: i32) -> (i32, i32) {
    %c0_i32 = arith.constant 0 : i32
    %c0_i32_0 = arith.constant 0 : i32
    %c0_i32_1 = arith.constant 0 : i32
    return %c0_i32, %c0_i32_0 : i32, i32
  }
  func.func @transform_3(%arg0: i32) -> (i32, i32) {
    %c0_i32 = arith.constant 0 : i32
    %c0_i32_0 = arith.constant 0 : i32
    return %arg0, %c0_i32 : i32, i32
  }
  func.func @transform_4(%arg0: i32) -> (i32, i32) {
    %c0_i32 = arith.constant 0 : i32
    %c0_i32_0 = arith.constant 0 : i32
    %c0_i32_1 = arith.constant 0 : i32
    return %c0_i32, %c0_i32_0 : i32, i32
  }
  func.func @transform_5(%arg0: i32) -> (i32, i32) {
    %c0_i32 = arith.constant 0 : i32
    %c0_i32_0 = arith.constant 0 : i32
    %c0_i32_1 = arith.constant 0 : i32
    return %c0_i32, %c0_i32_0 : i32, i32
  }
  func.func @transform_6(%arg0: i32) -> (i32, i32) {
    %c0_i32 = arith.constant 0 : i32
    %c0_i32_0 = arith.constant 0 : i32
    return %arg0, %c0_i32 : i32, i32
  }
}

module attributes {stable_mosaic.version = 11 : i64} {
  func.func @_head_kernel(%arg0: memref<2x32xbf16, #tpu.memory_space<vmem>>, %arg1: memref<32x32xbf16, #tpu.memory_space<vmem>>, %arg2: memref<1x32xf32, #tpu.memory_space<vmem>>, %arg3: memref<32x256xbf16, #tpu.memory_space<vmem>>, %arg4: memref<1x256xf32, #tpu.memory_space<vmem>>, %arg5: memref<256x128xbf16, #tpu.memory_space<vmem>>, %arg6: memref<1x128xf32, #tpu.memory_space<vmem>>, %arg7: memref<128x128xbf16, #tpu.memory_space<vmem>>, %arg8: memref<1x128xf32, #tpu.memory_space<vmem>>, %arg9: memref<2x128xf32, #tpu.memory_space<vmem>>) attributes {dimension_semantics = [], scalar_prefetch = 0 : i64, scratch_operands = 0 : i64, tpu.core_type = #tpu.core_type<tc>} {
    %c0 = arith.constant 0 : index
    %c0_0 = arith.constant 0 : index
    %0 = vector.load %arg0[%c0, %c0_0] : memref<2x32xbf16, #tpu.memory_space<vmem>>, vector<2x32xbf16>
    %c0_1 = arith.constant 0 : index
    %c0_2 = arith.constant 0 : index
    %1 = vector.load %arg1[%c0_1, %c0_2] : memref<32x32xbf16, #tpu.memory_space<vmem>>, vector<32x32xbf16>
    %cst = arith.constant dense<0.000000e+00> : vector<2x32xf32>
    %2 = tpu.matmul %0, %1, %cst {dimension_numbers = #tpu.dot_dimension_numbers<[1], [0], [0], [1], [0, 0, 1, 1], [], []>} : vector<2x32xbf16>, vector<32x32xbf16>, vector<2x32xf32> -> vector<2x32xf32>
    %c0_3 = arith.constant 0 : index
    %c0_4 = arith.constant 0 : index
    %3 = vector.load %arg2[%c0_3, %c0_4] : memref<1x32xf32, #tpu.memory_space<vmem>>, vector<1x32xf32>
    %4 = vector.broadcast %3 : vector<1x32xf32> to vector<2x32xf32>
    %5 = arith.addf %2, %4 : vector<2x32xf32>
    %6 = math.tanh %5 : vector<2x32xf32>
    %7 = arith.truncf %6 : vector<2x32xf32> to vector<2x32xbf16>
    %c0_5 = arith.constant 0 : index
    %c0_6 = arith.constant 0 : index
    %8 = vector.load %arg3[%c0_5, %c0_6] : memref<32x256xbf16, #tpu.memory_space<vmem>>, vector<32x256xbf16>
    %cst_7 = arith.constant dense<0.000000e+00> : vector<2x256xf32>
    %9 = tpu.matmul %7, %8, %cst_7 {dimension_numbers = #tpu.dot_dimension_numbers<[1], [0], [0], [1], [0, 0, 1, 1], [], []>} : vector<2x32xbf16>, vector<32x256xbf16>, vector<2x256xf32> -> vector<2x256xf32>
    %c0_8 = arith.constant 0 : index
    %c0_9 = arith.constant 0 : index
    %10 = vector.load %arg4[%c0_8, %c0_9] : memref<1x256xf32, #tpu.memory_space<vmem>>, vector<1x256xf32>
    %11 = vector.broadcast %10 : vector<1x256xf32> to vector<2x256xf32>
    %12 = arith.addf %9, %11 : vector<2x256xf32>
    %cst_10 = arith.constant 0.000000e+00 : f32
    %13 = vector.broadcast %cst_10 : f32 to vector<2x256xf32>
    %14 = arith.maximumf %12, %13 : vector<2x256xf32>
    %15 = arith.truncf %14 : vector<2x256xf32> to vector<2x256xbf16>
    %c0_11 = arith.constant 0 : index
    %c0_12 = arith.constant 0 : index
    %16 = vector.load %arg5[%c0_11, %c0_12] : memref<256x128xbf16, #tpu.memory_space<vmem>>, vector<256x128xbf16>
    %cst_13 = arith.constant dense<0.000000e+00> : vector<2x128xf32>
    %17 = tpu.matmul %15, %16, %cst_13 {dimension_numbers = #tpu.dot_dimension_numbers<[1], [0], [0], [1], [0, 0, 1, 1], [], []>} : vector<2x256xbf16>, vector<256x128xbf16>, vector<2x128xf32> -> vector<2x128xf32>
    %c0_14 = arith.constant 0 : index
    %c0_15 = arith.constant 0 : index
    %18 = vector.load %arg6[%c0_14, %c0_15] : memref<1x128xf32, #tpu.memory_space<vmem>>, vector<1x128xf32>
    %19 = vector.broadcast %18 : vector<1x128xf32> to vector<2x128xf32>
    %20 = arith.addf %17, %19 : vector<2x128xf32>
    %cst_16 = arith.constant 0.000000e+00 : f32
    %21 = vector.broadcast %cst_16 : f32 to vector<2x128xf32>
    %22 = arith.maximumf %20, %21 : vector<2x128xf32>
    %23 = arith.truncf %22 : vector<2x128xf32> to vector<2x128xbf16>
    %c0_17 = arith.constant 0 : index
    %c0_18 = arith.constant 0 : index
    %24 = vector.load %arg7[%c0_17, %c0_18] : memref<128x128xbf16, #tpu.memory_space<vmem>>, vector<128x128xbf16>
    %cst_19 = arith.constant dense<0.000000e+00> : vector<2x128xf32>
    %25 = tpu.matmul %23, %24, %cst_19 {dimension_numbers = #tpu.dot_dimension_numbers<[1], [0], [0], [1], [0, 0, 1, 1], [], []>} : vector<2x128xbf16>, vector<128x128xbf16>, vector<2x128xf32> -> vector<2x128xf32>
    %c0_20 = arith.constant 0 : index
    %c0_21 = arith.constant 0 : index
    %26 = vector.load %arg8[%c0_20, %c0_21] : memref<1x128xf32, #tpu.memory_space<vmem>>, vector<1x128xf32>
    %27 = vector.broadcast %26 : vector<1x128xf32> to vector<2x128xf32>
    %28 = arith.addf %25, %27 : vector<2x128xf32>
    %c0_22 = arith.constant 0 : index
    %c0_23 = arith.constant 0 : index
    %29 = vector.load %arg9[%c0_22, %c0_23] : memref<2x128xf32, #tpu.memory_space<vmem>>, vector<2x128xf32>
    tpu.vector_store %arg9[%c0_22, %c0_23], %28 {strides = array<i32>} : memref<2x128xf32, #tpu.memory_space<vmem>>, vector<2x128xf32>,
    return
  }
}

</mosaic_0001>

<bundles_post_ra>
// kernel: sentiment_forward.11
= control target key start
LH: loop header
LB: loop body
LE: loop exit
PB: predicated region body
PF: predicated region fallthrough
CT: control target
= control target key end

     0   :  { %s563_s12 = smov 0   ;;  %s565_s13 = smov 0   ;;  %s605_s0 = inlined_call_operand.vmem [shape: bf16[32,32], index: 0, kind: input, shape index: {}]   ;;  %s606_s1 = inlined_call_operand.vmem [shape: bf16[3,32,32], index: 1, kind: input, shape index: {}]   ;;  %s607_s2 = inlined_call_operand.vmem [shape: f32[3,1,32], index: 2, kind: input, shape index: {}]   ;;  %s608_s3 = inlined_call_operand.vmem [shape: bf16[3,32,32], index: 3, kind: output, shape index: {}]  }
   0x1   :  { %s567_s14 = smov 0  }
   0x2 LB: > { %s25_s15 = sadd.s32 1, %s537_s13  ;;  %p455_p0 = scmp.ge.s32.totalorder %s541_s14, 1  ;;  %s541_s14 = sphi %s567_s14, %s13_s14   ;;  %s537_s13 = sphi %s565_s13, %s610_s13   ;;  %s533_s12 = sphi %s563_s12, %s609_s12  }
   0x3   : > { %p27_p1 = scmp.ge.s32.totalorder %s25_s15, 3  ;;  %p170_p2 = scmp.lt.s32.totalorder %s541_s14, 4 }
   0x5   : > { %s612_s15 = smov (%p27_p1, %s25_s15), 0  ;;  %p171_p3 = pnand %p455_p0, %p170_p2 }
   0x6   : > { %p212_p4 = scmp.lt.s32.totalorder (!%p171_p3), %s533_s12, 2 }
   0x7   : > { %174 = sbr.rel (%p171_p3) target bundleno = 228 (0xe4), region = 32 }
   0xc   : > { %v517_v0 = vld [vmem:[%s605_s0] sm:$0xff]   ;;  %vm268_vm0 = vcmask 261120   ;;  %s614_s12 = smov (!%p212_p4, %s533_s12), 2  ;;  %v518_v3 = vld [vmem:[%s605_s0 + $0x8] sm:$0xff]   ;;  %vm340_vm1 = vcmask 257024  }
   0xd   : > { %487 = vmatprep.mubr.msk.bf16.mxu0 %vm268_vm0, %v517_v0  ;;  %s473_s18 = sshll.u32 %s614_s12, 4  ;;  %s219_s26 = scalar_lea.vmem %s607_s2, %s614_s12 }
   0xe   : > { %s216_s21 = scalar_lea.vmem %s606_s1, %s473_s18  ;;  %v460_v4 = vld [vmem:[%s219_s26] ss:$0 sm:$0xff]  ;;  %s228_s29 = scalar_lea.vmem %s608_s3, %s473_s18 }
   0xf   : > { %v515_v1 = vld [vmem:[%s216_s21 + $0x8] sm:$0xff]   ;;  %v516_v2 = vld [vmem:[%s216_s21] sm:$0xff]  }
  0x10   : > { %483 = vmatprep.subr.bf16.mxu0 %v515_v1 }
  0x11   : > { %484 = vmatpush3.bf16.msra.mxu0 %v515_v1 }
  0x12   : > { %485 = vmatprep.subr.bf16.mxu0 %v516_v2 }
  0x15   : > { %486 = vmatpush3.bf16.msra.mxu0 %v516_v2 }
  0x18   : > { %488 = vmatmul.mubr.msk.bf16.vlgmr.msra.gmra.mxu0 %vm268_vm0, %v518_v3 }
  0xd8   : > { %v489_v5 = vpop.f32.mrf.mxu0 }
  0xd9   : > { %v318_v6 = vadd.f32 %v489_v5, %v460_v4 }
  0xda   : > { %v309_v7 = vpop.f32.mrf.mxu0 }
  0xdb   : > { %v477_v8 = vpack.c.bf16 %v318_v6, %v318_v6  ;;  %v310_v9 = vadd.f32 %v460_v4, %v309_v7 }
  0xdc   : > { %v490_v10 = vpop.f32.mrf.mxu0 }
  0xdd   : > { %343 = vst.msk [vmem:[%s228_s29 + $0x8] sm:$0xf] %vm340_vm1, %v477_v8  ;;  %v475_v11 = vpack.c.bf16 %v310_v9, %v310_v9  ;;  %v321_v12 = vadd.f32 %v490_v10, %v460_v4 }
  0xde   : > { %v312_v13 = vpop.f32.mrf.mxu0 }
  0xdf   : > { %341 = vst.msk [vmem:[%s228_s29] sm:$0xf] %vm340_vm1, %v475_v11  ;;  %v478_v14 = vpack.c.bf16 %v321_v12, %v321_v12  ;;  %v313_v15 = vadd.f32 %v460_v4, %v312_v13 }
  0xe1   : > { %344 = vst.msk [vmem:[%s228_s29 + $0xc] sm:$0xf] %vm340_vm1, %v478_v14  ;;  %v476_v16 = vpack.c.bf16 %v313_v15, %v313_v15 }
  0xe3   : > { %342 = vst.msk [vmem:[%s228_s29 + $0x4] sm:$0xf] %vm340_vm1, %v476_v16 }
  0xe4 PF: > { %s13_s14 = sadd.s32 1, %s541_s14   ;;  %s609_s12 = smov %s537_s13 }
  0xe5   : > { %p10_p5 = scmp.ge.s32.totalorder %s13_s14, 5   ;;  %s610_s13 = smov %s612_s15 }
  0xe7   :  { %12 = sbr.rel (!%p10_p5) target bundleno = 2 (0x2), region = 68 }

// kernel: sentiment_forward.14
= control target key start
LH: loop header
LB: loop body
LE: loop exit
PB: predicated region body
PF: predicated region fallthrough
CT: control target
= control target key end

     0   :  { %vm52_vm0 = vcmask 261120   ;;  %vm160_vm1 = vcmask 519168   ;;  %s255_s1 = inlined_call_operand.vmem [shape: bf16[32,64], index: 1, kind: input, shape index: {}]   ;;  %s256_s0 = inlined_call_operand.vmem [shape: bf16[32,32], index: 0, kind: input, shape index: {}]   ;;  %s257_s2 = inlined_call_operand.vmem [shape: f32[1,64], index: 2, kind: input, shape index: {}]   ;;  %s258_s3 = inlined_call_operand.vmem [shape: bf16[32,64], index: 3, kind: output, shape index: {}]  }
   0x1   :  { %v196_v0 = vld [vmem:[%s255_s1 + $0x8] sm:$0xff]   ;;  %v197_v1 = vld [vmem:[%s255_s1] sm:$0xff]  }
   0x2   :  { %188 = vmatprep.subr.bf16.mxu0 %v196_v0  ;;  %v198_v2 = vld [vmem:[%s256_s0] sm:$0xff]   ;;  %v199_v3 = vld [vmem:[%s256_s0 + $0x8] sm:$0xff]  }
   0x3   :  { %189 = vmatpush3.bf16.msra.mxu0 %v196_v0  ;;  %192 = vmatprep.mubr.msk.bf16.mxu0 %vm52_vm0, %v198_v2  ;;  %v169_v4 = vld [vmem:[%s257_s2] ss:$0 sm:$0xff] }
   0x4   :  { %190 = vmatprep.subr.bf16.mxu0 %v197_v1 }
   0x7   :  { %191 = vmatpush3.bf16.msra.mxu0 %v197_v1 }
   0xa   :  { %193 = vmatmul.mubr.msk.bf16.vlgmr.msra.gmra.mxu0 %vm52_vm0, %v199_v3 }
  0xca   :  { %v194_v5 = vpop.f32.mrf.mxu0 }
  0xcb   :  { %v102_v6 = vadd.f32 %v194_v5, %v169_v4 }
  0xcc   :  { %v93_v7 = vpop.f32.mrf.mxu0 }
  0xcd   :  { %v110_v8 = vmul.f32 %v102_v6, %v102_v6  ;;  %v94_v9 = vadd.f32 %v169_v4, %v93_v7 }
  0xce   :  { %v195_v10 = vpop.f32.mrf.mxu0 }
  0xcf   :  { %v114_v11 = vmul.f32 %v110_v8, %v102_v6  ;;  %v108_v12 = vmul.f32 %v94_v9, %v94_v9  ;;  %v105_v13 = vadd.f32 %v195_v10, %v169_v4 }
  0xd0   :  { %v96_v14 = vpop.f32.mrf.mxu0 }
  0xd1   :  { %v118_v15 = vmul.f32 0.044715, %v114_v11  ;;  %v112_v16 = vmul.f32 %v108_v12, %v94_v9  ;;  %v111_v17 = vmul.f32 %v105_v13, %v105_v13  ;;  %v97_v18 = vadd.f32 %v169_v4, %v96_v14 }
  0xd3   :  { %v122_v19 = vadd.f32 %v118_v15, %v102_v6  ;;  %v116_v20 = vmul.f32 0.044715, %v112_v16  ;;  %v115_v21 = vmul.f32 %v111_v17, %v105_v13  ;;  %v109_v22 = vmul.f32 %v97_v18, %v97_v18 }
  0xd5   :  { %v126_v23 = vmul.f32 0.7978846, %v122_v19  ;;  %v120_v24 = vadd.f32 %v116_v20, %v94_v9  ;;  %v119_v25 = vmul.f32 0.044715, %v115_v21  ;;  %v113_v26 = vmul.f32 %v109_v22, %v97_v18 }
  0xd7   :  { %200 = vtanh.f32 %v126_v23  ;;  %v124_v27 = vmul.f32 0.7978846, %v120_v24  ;;  %v123_v28 = vadd.f32 %v119_v25, %v105_v13  ;;  %v117_v29 = vmul.f32 0.044715, %v113_v26 }
  0xd9   :  { %202 = vtanh.f32 %v124_v27  ;;  %v127_v30 = vmul.f32 0.7978846, %v123_v28  ;;  %v121_v31 = vadd.f32 %v117_v29, %v97_v18 }
  0xdb   :  { %204 = vtanh.f32 %v127_v30  ;;  %v125_v32 = vmul.f32 0.7978846, %v121_v31 }
  0xdd   :  { %206 = vtanh.f32 %v125_v32 }
  0xe4   :  { %v201_v33 = vpop.eup %200 }
  0xe5   :  { %v134_v34 = vadd.f32 1.0, %v201_v33 }
  0xe6   :  { %v203_v35 = vpop.eup %202 }
  0xe7   :  { %v138_v36 = vmul.f32 0.5, %v134_v34  ;;  %v132_v37 = vadd.f32 1.0, %v203_v35 }
  0xe8   :  { %v205_v38 = vpop.eup %204 }
  0xe9   :  { %v142_v39 = vmul.f32 %v138_v36, %v102_v6  ;;  %v136_v40 = vmul.f32 0.5, %v132_v37  ;;  %v135_v41 = vadd.f32 1.0, %v205_v38 }
  0xea   :  { %v207_v42 = vpop.eup %206 }
  0xeb   :  { %v182_v43 = vpack.c.bf16 %v142_v39, %v142_v39  ;;  %v140_v44 = vmul.f32 %v136_v40, %v94_v9  ;;  %v139_v45 = vmul.f32 0.5, %v135_v41  ;;  %v133_v46 = vadd.f32 1.0, %v207_v42 }
  0xed   :  { %163 = vst.msk [vmem:[%s258_s3 + $0x8] sm:$0xf] %vm160_vm1, %v182_v43  ;;  %v180_v47 = vpack.c.bf16 %v140_v44, %v140_v44  ;;  %v143_v48 = vmul.f32 %v139_v45, %v105_v13  ;;  %v137_v49 = vmul.f32 0.5, %v133_v46 }
  0xef   :  { %161 = vst.msk [vmem:[%s258_s3] sm:$0xf] %vm160_vm1, %v180_v47  ;;  %v183_v50 = vpack.c.bf16 %v143_v48, %v143_v48  ;;  %v141_v51 = vmul.f32 %v137_v49, %v97_v18 }
  0xf1   :  { %164 = vst.msk [vmem:[%s258_s3 + $0xc] sm:$0xf] %vm160_vm1, %v183_v50  ;;  %v181_v52 = vpack.c.bf16 %v141_v51, %v141_v51 }
  0xf3   :  { %162 = vst.msk [vmem:[%s258_s3 + $0x4] sm:$0xf] %vm160_vm1, %v181_v52 }

// kernel: sentiment_forward.13
= control target key start
LH: loop header
LB: loop body
LE: loop exit
PB: predicated region body
PF: predicated region fallthrough
CT: control target
= control target key end

     0   :  { %vm61_vm0 = vcmask 261120   ;;  %vm220_vm1 = vcmask 257024   ;;  %s367_s1 = inlined_call_operand.vmem [shape: bf16[32,32], index: 1, kind: input, shape index: {}]   ;;  %s368_s0 = inlined_call_operand.vmem [shape: bf16[32,32], index: 0, kind: input, shape index: {}]   ;;  %s369_s3 = inlined_call_operand.vmem [shape: bf16[32,32], index: 3, kind: input, shape index: {}]   ;;  %s370_s2 = inlined_call_operand.vmem [shape: f32[1,32], index: 2, kind: input, shape index: {}]   ;;  %s371_s4 = inlined_call_operand.vmem [shape: f32[1,32], index: 4, kind: input, shape index: {}]   ;;  %s372_s5 = inlined_call_operand.vmem [shape: f32[1,32], index: 5, kind: input, shape index: {}]   ;;  %s373_s6 = inlined_call_operand.vmem [shape: bf16[32,32], index: 6, kind: output, shape index: {}]  }
   0x1   :  { %v267_v0 = vld [vmem:[%s367_s1 + $0x8] sm:$0xff]   ;;  %v268_v1 = vld [vmem:[%s367_s1] sm:$0xff]  }
   0x2   :  { %259 = vmatprep.subr.bf16.mxu0 %v267_v0  ;;  %v269_v2 = vld [vmem:[%s368_s0] sm:$0xff]   ;;  %v270_v3 = vld [vmem:[%s368_s0 + $0x8] sm:$0xff]  }
   0x3   :  { %260 = vmatpush3.bf16.msra.mxu0 %v267_v0  ;;  %263 = vmatprep.mubr.msk.bf16.mxu0 %vm61_vm0, %v269_v2  ;;  %v254_v4 = vld [vmem:[%s369_s3 + $0x8] sm:$0xff]   ;;  %v229_v5 = vld [vmem:[%s370_s2] ss:$0 sm:$0xff] }
   0x4   :  { %261 = vmatprep.subr.bf16.mxu0 %v268_v1  ;;  %v247_v6 = vld [vmem:[%s369_s3] sm:$0xff]   ;;  %v252_v7 = vunpack.c.l.bf16 %v254_v4  ;;  %v253_v14 = vunpack.c.h.bf16 %v254_v4 }
   0x5   :  { %v248_v10 = vunpack.c.l.bf16 %v247_v6  ;;  %v249_v19 = vunpack.c.h.bf16 %v247_v6  ;;  %v236_v60 = vld [vmem:[%s371_s4] ss:$0 sm:$0xff] }
   0x6   :  { %v237_v62 = vld [vmem:[%s372_s5] ss:$0 sm:$0xff] }
   0x7   :  { %262 = vmatpush3.bf16.msra.mxu0 %v268_v1 }
   0xa   :  { %264 = vmatmul.mubr.msk.bf16.vlgmr.msra.gmra.mxu0 %vm61_vm0, %v270_v3 }
  0xca   :  { %v265_v8 = vpop.f32.mrf.mxu0 }
  0xcb   :  { %v111_v9 = vadd.f32 %v265_v8, %v229_v5 }
  0xcc   :  { %v102_v11 = vpop.f32.mrf.mxu0 }
  0xcd   :  { %v103_v12 = vadd.f32 %v229_v5, %v102_v11  ;;  %v127_v13 = vadd.f32 %v252_v7, %v111_v9 }
  0xce   :  { %v266_v15 = vpop.f32.mrf.mxu0 }
  0xcf   :  { %v114_v16 = vadd.f32 %v266_v15, %v229_v5  ;;  %v135_v17 = vsel %vm61_vm0, %v127_v13, 0.0  ;;  %v125_v18 = vadd.f32 %v248_v10, %v103_v12 }
  0xd0   :  { %136 = vadd.xlane.f32.xlu1 %v135_v17  ;;  %v105_v20 = vpop.f32.mrf.mxu0 }
  0xd1   :  { %v106_v21 = vadd.f32 %v229_v5, %v105_v20  ;;  %v129_v22 = vsel %vm61_vm0, %v125_v18, 0.0  ;;  %v128_v23 = vadd.f32 %v253_v14, %v114_v16 }
  0xd2   :  { %130 = vadd.xlane.f32.xlu0 %v129_v22 }
  0xd3   :  { %v138_v24 = vsel %vm61_vm0, %v128_v23, 0.0  ;;  %v126_v25 = vadd.f32 %v249_v19, %v106_v21 }
  0xd4   :  { %139 = vadd.xlane.f32.xlu1 %v138_v24 }
  0xd5   :  { %v132_v26 = vsel %vm61_vm0, %v126_v25, 0.0 }
  0xd6   :  { %133 = vadd.xlane.f32.xlu0 %v132_v26 }
 0x159   :  { %v137_v27 = vpop.xlane.xlu1 %136 }
 0x15a   :  { %v144_v28 = vmul.f32 0.03125, %v137_v27 }
 0x15b   :  { %v131_v29 = vpop.xlane.xlu0 %130 }
 0x15c   :  { %v142_v30 = vmul.f32 0.03125, %v131_v29  ;;  %v148_v32 = vsub.f32 %v127_v13, %v144_v28 }
 0x15d   :  { %v140_v31 = vpop.xlane.xlu1 %139 }
 0x15e   :  { %v146_v33 = vsub.f32 %v125_v18, %v142_v30  ;;  %v145_v34 = vmul.f32 0.03125, %v140_v31  ;;  %v152_v41 = vmul.f32 %v148_v32, %v148_v32 }
 0x15f   :  { %v134_v35 = vpop.xlane.xlu0 %133 }
 0x160   :  { %v143_v36 = vmul.f32 0.03125, %v134_v35  ;;  %v150_v37 = vmul.f32 %v146_v33, %v146_v33  ;;  %v149_v38 = vsub.f32 %v128_v23, %v145_v34  ;;  %v160_v43 = vsel %vm61_vm0, %v152_v41, 0.0 }
 0x162   :  { %v147_v39 = vsub.f32 %v126_v25, %v143_v36  ;;  %v154_v40 = vsel %vm61_vm0, %v150_v37, 0.0  ;;  %v153_v45 = vmul.f32 %v149_v38, %v149_v38 }
 0x163   :  { %155 = vadd.xlane.f32.xlu0 %v154_v40 }
 0x164   :  { %v151_v42 = vmul.f32 %v147_v39, %v147_v39  ;;  %v163_v46 = vsel %vm61_vm0, %v153_v45, 0.0 }
 0x166   :  { %v157_v44 = vsel %vm61_vm0, %v151_v42, 0.0 }
 0x167   :  { %161 = vadd.xlane.f32.xlu0 %v160_v43  ;;  %158 = vadd.xlane.f32.xlu1 %v157_v44 }
 0x16b   :  { %164 = vadd.xlane.f32.xlu1 %v163_v46 }
 0x1ec   :  { %v156_v47 = vpop.xlane.xlu0 %155 }
 0x1ed   :  { %v166_v48 = vmul.f32 0.03125, %v156_v47 }
 0x1ef   :  { %v170_v49 = vadd.f32 1e-12, %v166_v48 }
 0x1f0   :  { %v159_v50 = vpop.xlane.xlu1 %158  ;;  %v162_v51 = vpop.xlane.xlu0 %161 }
 0x1f1   :  { %271 = vrsqrt.f32 %v170_v49  ;;  %v167_v52 = vmul.f32 0.03125, %v159_v50  ;;  %v168_v53 = vmul.f32 0.03125, %v162_v51 }
 0x1f3   :  { %v171_v54 = vadd.f32 1e-12, %v167_v52  ;;  %v172_v55 = vadd.f32 1e-12, %v168_v53 }
 0x1f4   :  { %v165_v56 = vpop.xlane.xlu1 %164 }
 0x1f5   :  { %273 = vrsqrt.f32 %v171_v54  ;;  %v169_v57 = vmul.f32 0.03125, %v165_v56 }
 0x1f6   :  { %275 = vrsqrt.f32 %v172_v55 }
 0x1f7   :  { %v173_v58 = vadd.f32 1e-12, %v169_v57 }
 0x1f9   :  { %277 = vrsqrt.f32 %v173_v58 }
 0x1fe   :  { %v272_v59 = vpop.eup %271 }
 0x1ff   :  { %v178_v61 = vmul.f32 %v272_v59, %v146_v33 }
 0x201   :  { %v189_v63 = vmul.f32 %v236_v60, %v178_v61 }
 0x202   :  { %v274_v0 = vpop.eup %273 }
 0x203   :  { %v276_v1 = vpop.eup %275  ;;  %v200_v2 = vadd.f32 %v237_v62, %v189_v63  ;;  %v179_v3 = vmul.f32 %v274_v0, %v147_v39 }
 0x204   :  { %v180_v4 = vmul.f32 %v276_v1, %v148_v32 }
 0x205   :  { %v242_v5 = vpack.c.bf16 %v200_v2, %v200_v2  ;;  %v190_v6 = vmul.f32 %v236_v60, %v179_v3 }
 0x206   :  { %v278_v7 = vpop.eup %277  ;;  %v191_v8 = vmul.f32 %v236_v60, %v180_v4 }
 0x207   :  { %221 = vst.msk [vmem:[%s373_s6] sm:$0xf] %vm220_vm1, %v242_v5  ;;  %v201_v9 = vadd.f32 %v237_v62, %v190_v6  ;;  %v181_v10 = vmul.f32 %v278_v7, %v149_v38 }
 0x208   :  { %v202_v11 = vadd.f32 %v237_v62, %v191_v8 }
 0x209   :  { %v243_v12 = vpack.c.bf16 %v201_v9, %v201_v9  ;;  %v192_v13 = vmul.f32 %v236_v60, %v181_v10 }
 0x20a   :  { %v244_v14 = vpack.c.bf16 %v202_v11, %v202_v11 }
 0x20b   :  { %222 = vst.msk [vmem:[%s373_s6 + $0x4] sm:$0xf] %vm220_vm1, %v243_v12  ;;  %v203_v15 = vadd.f32 %v237_v62, %v192_v13 }
 0x20c   :  { %223 = vst.msk [vmem:[%s373_s6 + $0x8] sm:$0xf] %vm220_vm1, %v244_v14 }
 0x20d   :  { %v245_v16 = vpack.c.bf16 %v203_v15, %v203_v15 }
 0x20f   :  { %224 = vst.msk [vmem:[%s373_s6 + $0xc] sm:$0xf] %vm220_vm1, %v245_v16 }

// kernel: sentiment_forward.15
= control target key start
LH: loop header
LB: loop body
LE: loop exit
PB: predicated region body
PF: predicated region fallthrough
CT: control target
= control target key end

     0   :  { %vm77_vm0 = vcmask 523264   ;;  %vm145_vm1 = vcmask 261120   ;;  %vm237_vm2 = vcmask 257024   ;;  %s398_s1 = inlined_call_operand.vmem [shape: bf16[64,32], index: 1, kind: input, shape index: {}]   ;;  %s399_s0 = inlined_call_operand.vmem [shape: bf16[32,64], index: 0, kind: input, shape index: {}]   ;;  %s400_s3 = inlined_call_operand.vmem [shape: bf16[32,32], index: 3, kind: input, shape index: {}]   ;;  %s401_s2 = inlined_call_operand.vmem [shape: f32[1,32], index: 2, kind: input, shape index: {}]   ;;  %s402_s4 = inlined_call_operand.vmem [shape: f32[1,32], index: 4, kind: input, shape index: {}]   ;;  %s403_s5 = inlined_call_operand.vmem [shape: f32[1,32], index: 5, kind: input, shape index: {}]   ;;  %s404_s6 = inlined_call_operand.vmem [shape: bf16[32,32], index: 6, kind: output, shape index: {}]  }
   0x1   :  { %v292_v0 = vld [vmem:[%s398_s1 + $0x18] sm:$0xff]   ;;  %v293_v1 = vld [vmem:[%s398_s1 + $0x10] sm:$0xff]   ;;  %v294_v2 = vld [vmem:[%s398_s1 + $0x8] sm:$0xff]  }
   0x2   :  { %280 = vmatprep.subr.bf16.mxu0 %v292_v0  ;;  %v296_v3 = vld [vmem:[%s399_s0] sm:$0xff]   ;;  %v297_v5 = vld [vmem:[%s399_s0 + $0x8] sm:$0xff]  }
   0x3   :  { %281 = vmatpush3.bf16.msra.mxu0 %v292_v0  ;;  %288 = vmatprep.mubr.msk.bf16.mxu0 %vm77_vm0, %v296_v3  ;;  %v295_v4 = vld [vmem:[%s398_s1] sm:$0xff]   ;;  %v273_v6 = vld [vmem:[%s400_s3 + $0x8] sm:$0xff]  }
   0x4   :  { %282 = vmatprep.subr.bf16.mxu0 %v293_v1  ;;  %v246_v7 = vld [vmem:[%s401_s2] ss:$0 sm:$0xff]  ;;  %v271_v9 = vunpack.c.l.bf16 %v273_v6  ;;  %v272_v16 = vunpack.c.h.bf16 %v273_v6 }
   0x5   :  { %v266_v8 = vld [vmem:[%s400_s3] sm:$0xff]  }
   0x6   :  { %v267_v12 = vunpack.c.l.bf16 %v266_v8  ;;  %v268_v21 = vunpack.c.h.bf16 %v266_v8  ;;  %v255_v62 = vld [vmem:[%s402_s4] ss:$0 sm:$0xff] }
   0x7   :  { %283 = vmatpush3.bf16.msra.mxu0 %v293_v1  ;;  %v256_v0 = vld [vmem:[%s403_s5] ss:$0 sm:$0xff] }
   0x8   :  { %284 = vmatprep.subr.bf16.mxu0 %v294_v2 }
   0xb   :  { %285 = vmatpush3.bf16.msra.mxu0 %v294_v2 }
   0xc   :  { %286 = vmatprep.subr.bf16.mxu0 %v295_v4 }
   0xf   :  { %287 = vmatpush3.bf16.msra.mxu0 %v295_v4 }
  0x12   :  { %289 = vmatmul.mubr.msk.bf16.vlgmr.msra.gmra.mxu0 %vm77_vm0, %v297_v5 }
  0xd2   :  { %v290_v10 = vpop.f32.mrf.mxu0 }
  0xd3   :  { %v127_v11 = vadd.f32 %v290_v10, %v246_v7 }
  0xd4   :  { %v118_v13 = vpop.f32.mrf.mxu0 }
  0xd5   :  { %v119_v14 = vadd.f32 %v246_v7, %v118_v13  ;;  %v143_v15 = vadd.f32 %v271_v9, %v127_v11 }
  0xd6   :  { %v291_v17 = vpop.f32.mrf.mxu0 }
  0xd7   :  { %v130_v18 = vadd.f32 %v291_v17, %v246_v7  ;;  %v152_v19 = vsel %vm145_vm1, %v143_v15, 0.0  ;;  %v141_v20 = vadd.f32 %v267_v12, %v119_v14 }
  0xd8   :  { %153 = vadd.xlane.f32.xlu1 %v152_v19  ;;  %v121_v22 = vpop.f32.mrf.mxu0 }
  0xd9   :  { %v122_v23 = vadd.f32 %v246_v7, %v121_v22  ;;  %v146_v24 = vsel %vm145_vm1, %v141_v20, 0.0  ;;  %v144_v25 = vadd.f32 %v272_v16, %v130_v18 }
  0xda   :  { %147 = vadd.xlane.f32.xlu0 %v146_v24 }
  0xdb   :  { %v155_v26 = vsel %vm145_vm1, %v144_v25, 0.0  ;;  %v142_v27 = vadd.f32 %v268_v21, %v122_v23 }
  0xdc   :  { %156 = vadd.xlane.f32.xlu1 %v155_v26 }
  0xdd   :  { %v149_v28 = vsel %vm145_vm1, %v142_v27, 0.0 }
  0xde   :  { %150 = vadd.xlane.f32.xlu0 %v149_v28 }
 0x161   :  { %v154_v29 = vpop.xlane.xlu1 %153 }
 0x162   :  { %v161_v30 = vmul.f32 0.03125, %v154_v29 }
 0x163   :  { %v148_v31 = vpop.xlane.xlu0 %147 }
 0x164   :  { %v159_v32 = vmul.f32 0.03125, %v148_v31  ;;  %v165_v34 = vsub.f32 %v143_v15, %v161_v30 }
 0x165   :  { %v157_v33 = vpop.xlane.xlu1 %156 }
 0x166   :  { %v163_v35 = vsub.f32 %v141_v20, %v159_v32  ;;  %v162_v36 = vmul.f32 0.03125, %v157_v33  ;;  %v169_v43 = vmul.f32 %v165_v34, %v165_v34 }
 0x167   :  { %v151_v37 = vpop.xlane.xlu0 %150 }
 0x168   :  { %v160_v38 = vmul.f32 0.03125, %v151_v37  ;;  %v167_v39 = vmul.f32 %v163_v35, %v163_v35  ;;  %v166_v40 = vsub.f32 %v144_v25, %v162_v36  ;;  %v177_v45 = vsel %vm145_vm1, %v169_v43, 0.0 }
 0x16a   :  { %v164_v41 = vsub.f32 %v142_v27, %v160_v38  ;;  %v171_v42 = vsel %vm145_vm1, %v167_v39, 0.0  ;;  %v170_v47 = vmul.f32 %v166_v40, %v166_v40 }
 0x16b   :  { %172 = vadd.xlane.f32.xlu0 %v171_v42 }
 0x16c   :  { %v168_v44 = vmul.f32 %v164_v41, %v164_v41  ;;  %v180_v48 = vsel %vm145_vm1, %v170_v47, 0.0 }
 0x16e   :  { %v174_v46 = vsel %vm145_vm1, %v168_v44, 0.0 }
 0x16f   :  { %178 = vadd.xlane.f32.xlu0 %v177_v45  ;;  %175 = vadd.xlane.f32.xlu1 %v174_v46 }
 0x173   :  { %181 = vadd.xlane.f32.xlu1 %v180_v48 }
 0x1f4   :  { %v173_v49 = vpop.xlane.xlu0 %172 }
 0x1f5   :  { %v183_v50 = vmul.f32 0.03125, %v173_v49 }
 0x1f7   :  { %v187_v51 = vadd.f32 1e-12, %v183_v50 }
 0x1f8   :  { %v176_v52 = vpop.xlane.xlu1 %175  ;;  %v179_v53 = vpop.xlane.xlu0 %178 }
 0x1f9   :  { %298 = vrsqrt.f32 %v187_v51  ;;  %v184_v54 = vmul.f32 0.03125, %v176_v52  ;;  %v185_v55 = vmul.f32 0.03125, %v179_v53 }
 0x1fb   :  { %v188_v56 = vadd.f32 1e-12, %v184_v54  ;;  %v189_v57 = vadd.f32 1e-12, %v185_v55 }
 0x1fc   :  { %v182_v58 = vpop.xlane.xlu1 %181 }
 0x1fd   :  { %300 = vrsqrt.f32 %v188_v56  ;;  %v186_v59 = vmul.f32 0.03125, %v182_v58 }
 0x1fe   :  { %302 = vrsqrt.f32 %v189_v57 }
 0x1ff   :  { %v190_v60 = vadd.f32 1e-12, %v186_v59 }
 0x201   :  { %304 = vrsqrt.f32 %v190_v60 }
 0x206   :  { %v299_v61 = vpop.eup %298 }
 0x207   :  { %v195_v63 = vmul.f32 %v299_v61, %v163_v35 }
 0x209   :  { %v206_v1 = vmul.f32 %v255_v62, %v195_v63 }
 0x20a   :  { %v301_v2 = vpop.eup %300 }
 0x20b   :  { %v303_v3 = vpop.eup %302  ;;  %v217_v4 = vadd.f32 %v256_v0, %v206_v1  ;;  %v196_v5 = vmul.f32 %v301_v2, %v164_v41 }
 0x20c   :  { %v197_v6 = vmul.f32 %v303_v3, %v165_v34 }
 0x20d   :  { %v261_v7 = vpack.c.bf16 %v217_v4, %v217_v4  ;;  %v207_v8 = vmul.f32 %v255_v62, %v196_v5 }
 0x20e   :  { %v305_v9 = vpop.eup %304  ;;  %v208_v10 = vmul.f32 %v255_v62, %v197_v6 }
 0x20f   :  { %238 = vst.msk [vmem:[%s404_s6] sm:$0xf] %vm237_vm2, %v261_v7  ;;  %v218_v11 = vadd.f32 %v256_v0, %v207_v8  ;;  %v198_v12 = vmul.f32 %v305_v9, %v166_v40 }
 0x210   :  { %v219_v13 = vadd.f32 %v256_v0, %v208_v10 }
 0x211   :  { %v262_v14 = vpack.c.bf16 %v218_v11, %v218_v11  ;;  %v209_v15 = vmul.f32 %v255_v62, %v198_v12 }
 0x212   :  { %v263_v16 = vpack.c.bf16 %v219_v13, %v219_v13 }
 0x213   :  { %239 = vst.msk [vmem:[%s404_s6 + $0x4] sm:$0xf] %vm237_vm2, %v262_v14  ;;  %v220_v17 = vadd.f32 %v256_v0, %v209_v15 }
 0x214   :  { %240 = vst.msk [vmem:[%s404_s6 + $0x8] sm:$0xf] %vm237_vm2, %v263_v16 }
 0x215   :  { %v264_v18 = vpack.c.bf16 %v220_v17, %v220_v17 }
 0x217   :  { %241 = vst.msk [vmem:[%s404_s6 + $0xc] sm:$0xf] %vm237_vm2, %v264_v18 }

// kernel: sentiment_forward.12
= control target key start
LH: loop header
LB: loop body
LE: loop exit
PB: predicated region body
PF: predicated region fallthrough
CT: control target
= control target key end

     0   :  { %s1087_s15 = smov 0   ;;  %s1089_s16 = smov 0   ;;  %s1249_s0 = inlined_call_operand.vmem [shape: bf16[3,32,32], index: 0, kind: input, shape index: {}, may-alias: {0,1,2}]   ;;  %s1250_s1 = inlined_call_operand.vmem [shape: bf16[3,32,32], index: 1, kind: input, shape index: {}, may-alias: {0,1,2}]   ;;  %s1251_s2 = inlined_call_operand.vmem [shape: bf16[3,32,32], index: 2, kind: input, shape index: {}, may-alias: {0,1,2}]   ;;  %s1252_s3 = inlined_call_operand.vmem [shape: f32[2,1,16], index: 3, kind: input, shape index: {}]   ;;  %s1253_s4 = inlined_call_operand.vmem [shape: bf16[32,32], index: 4, kind: output, shape index: {}]  }
   0x1   :  { %s1091_s17 = smov 0  }
   0x2 LB: > { %s33_s18 = sadd.s32 1, %s1050_s16  ;;  %p900_p0 = scmp.ge.s32.totalorder %s1054_s17, 1  ;;  %s1054_s17 = sphi %s1091_s17, %s14_s17   ;;  %s1050_s16 = sphi %s1089_s16, %s1255_s16   ;;  %s1046_s15 = sphi %s1087_s15, %s1254_s15  }
   0x3   : > { %p35_p1 = scmp.ge.s32.totalorder %s33_s18, 2  ;;  %p233_p2 = scmp.lt.s32.totalorder %s1054_s17, 3 }
   0x5   : > { %s1257_s18 = smov (%p35_p1, %s33_s18), 0  ;;  %p234_p3 = pnand %p900_p0, %p233_p2 }
   0x6   : > { %s901_s19 = sshll.u32 (!%p234_p3), %s1046_s15, 1  ;;  %p307_p5 = scmp.lt.s32.totalorder (!%p234_p3), %s1046_s15, 1 }
   0x7   : > { %237 = sbr.rel (%p234_p3) target bundleno = 1405 (0x57d), region = 36  ;;  %p283_p4 = scmp.lt.s32.totalorder (!%p234_p3), %s901_s19, 3 }
   0x8   : > { %s1060_s30 = smov (!%p234_p3), 112   ;;  %s1061_s8 = smov (!%p234_p3), 16  }
   0xc   : > { %vm335_vm0 = vcmask 130048   ;;  %v1056_v0 = vmov 0.0   ;;  %vm1057_vm1 = vmmov 0   ;;  %s1259_s19 = smov (!%p283_p4, %s901_s19), 3  ;;  %vm326_vm2 = vcmask 7168   ;;  %s1261_s15 = smov (!%p307_p5, %s1046_s15), 1 }
   0xd   : > { %946 = vmatprep.subr.bf16.mxu0 %v1056_v0  ;;  %336 = vst.msk [vmem:[#allocation4] sm:$0xff] %vm335_vm0, %v1056_v0  ;;  %337 = vst.msk [vmem:[#allocation4 + $0x8] sm:$0xff] %vm335_vm0, %v1056_v0  ;;  %948 = vmatprep.mubr.msk.bf16.mxu0 %vm1057_vm1, %v1056_v0  ;;  %s1122_s20 = sshll.u32 %s1259_s19, 2  ;;  %v1058_v4 = vmov -1e+30   ;;  %s312_s29 = scalar_lea.vmem %s1252_s3, %s1261_s15  ;;  %v1059_v14 = vmov 0  }
   0xe   : > { %338 = vst.msk [vmem:[#allocation4 + $0x10] sm:$0xff] %vm335_vm0, %v1056_v0  ;;  %339 = vst.msk [vmem:[#allocation4 + $0x18] sm:$0xff] %vm335_vm0, %v1056_v0  ;;  %952 = vmatprep.subr.bf16.mxu1 %v1056_v0  ;;  %954 = vmatprep.mubr.msk.bf16.mxu1 %vm1057_vm1, %v1056_v0  ;;  %s1128_s23 = scalar_lea.vmem %s1250_s1, %s1122_s20  ;;  %s1135_s26 = scalar_lea.vmem %s1249_s0, %s1122_s20  ;;  %v1160_v5 = vld [vmem:[%s312_s29] ss:$0 sm:$0xff]  ;;  %vm747_vm3 = vcmask 125952   ;;  %vm780_vm4 = vcmask 257152  }
   0xf   : > { %v1002_v1 = vld [vmem:[%s1128_s23 + $0x10] sm:$0xff]   ;;  %v1003_v3 = vld [vmem:[%s1135_s26] sm:$0xff]   ;;  %327 = vst.msk [vmem:[#allocation2] sm:$0xff] %vm326_vm2, %v1058_v4  ;;  %328 = vst.msk [vmem:[#allocation2 + $0x8] sm:$0xff] %vm326_vm2, %v1058_v4  ;;  %1000 = vset.pattern.permute.xlu1 %v1059_v14  ;;  %1001 = vset.pattern.permute.xlu0 %v1059_v14  ;;  %s1193_s7 = scalar_lea.vmem %s1251_s2, %s1122_s20  ;;  %s318_s11 = scalar_lea.vmem %s1253_s4, %s1122_s20 }
  0x10   : > { %v366_v2 = vsel %vm335_vm0, %v1002_v1, 0  ;;  %329 = vst.msk [vmem:[#allocation2 + $0x10] sm:$0xff] %vm326_vm2, %v1058_v4  ;;  %330 = vst.msk [vmem:[#allocation2 + $0x18] sm:$0xff] %vm326_vm2, %v1058_v4  ;;  %v1004_v15 = vld [vmem:[%s1128_s23 + $0x10] sm:$0xff]   ;;  %v1005_v24 = vld [vmem:[%s1135_s26] sm:$0xff]  }
  0x11   : > { %947 = vmatpush3.bf16.xpose.msra.mxu0 %v366_v2  ;;  %331 = vst.msk [vmem:[#allocation3] sm:$0xff] %vm326_vm2, %v1056_v0  ;;  %332 = vst.msk [vmem:[#allocation3 + $0x8] sm:$0xff] %vm326_vm2, %v1056_v0  ;;  %v1006_v25 = vld [vmem:[%s1193_s7 + $0x20] sm:$0xff]  }
  0x12   : > { %964 = vmatprep.subr.bf16.mxu0 %v1056_v0  ;;  %333 = vst.msk [vmem:[#allocation3 + $0x10] sm:$0xff] %vm326_vm2, %v1056_v0  ;;  %334 = vst.msk [vmem:[#allocation3 + $0x18] sm:$0xff] %vm326_vm2, %v1056_v0  ;;  %953 = vmatpush3.bf16.msra.mxu1 %v1006_v25  ;;  %v1007_v55 = vld [vmem:[%s1193_s7 + $0x20] sm:$0xff]  }
  0x13   : > { %958 = vmatprep.subr.bf16.mxu1 %v1056_v0 }
  0x16   : > { %v1168_v16 = vld [vmem:[#allocation2] sm:$0xff]  ;;  %v1173_v19 = vld [vmem:[#allocation2 + $0x8] sm:$0xff] }
  0x17   : > { %v595_v50 = vld [vmem:[#allocation2 + $0x10] sm:$0xff]  ;;  %v596_v53 = vld [vmem:[#allocation2 + $0x18] sm:$0xff] }
  0x18   : > { %949 = vmatmul.mubr.msk.bf16.vlgmr.msra.gmra.mxu0 %vm335_vm0, %v1003_v3  ;;  %v441_v25 = vld [vmem:[#allocation3] sm:$0xff] }
  0x19   : > { %966 = vmatprep.mubr.msk.bf16.mxu0 %vm1057_vm1, %v1056_v0 }
  0xd8   : > { %v402_v6 = vpop.f32.mrf.mxu0 }
  0xd9   : > { %v403_v7 = vadd.f32 %v1160_v5, %v402_v6 }
  0xda   : > { %v950_v8 = vpop.f32.mrf.mxu0 }
  0xdb   : > { %v411_v9 = vsel %vm335_vm0, %v403_v7, -inf }
  0xdc   : > { %412 = vmax.xlane.f32.xlu0 %v411_v9  ;;  %v405_v10 = vpop.f32.mrf.mxu0 }
  0xdd   : > { %v406_v11 = vadd.f32 %v1160_v5, %v405_v10 }
  0xde   : > { %v951_v12 = vpop.f32.mrf.mxu0 }
  0xdf   : > { %v414_v13 = vsel %vm335_vm0, %v406_v11, -inf }
  0xe0   : > { %415 = vmax.xlane.f32.xlu0 %v414_v13 }
  0xf6   : > { %545 = vrot.lane.b32.xlu0 %v1004_v15, %s1060_s30  ;;  %v628_v15 = vld [vmem:[#allocation3 + $0x10] sm:$0xff] }
 0x165   : > { %v413_v17 = vpop.xlane.xlu0 %412 }
 0x166   : > { %v1171_v18 = vmax.f32 %v1168_v16, %v413_v17 }
 0x168   : > { %v419_v20 = vsub.f32 %v1168_v16, %v1171_v18  ;;  %527 = vst.msk [vmem:[#allocation2] sm:$0xff] %vm326_vm2, %v1171_v18  ;;  %427 = vperm.xlu1 %1000, %v1171_v18  }
 0x169   : > { %v416_v21 = vpop.xlane.xlu0 %415 }
 0x16a   : > { %v1181_v22 = vmax.f32 %v1173_v19, %v416_v21  ;;  %v421_v13 = vmul.f32 1.442695, %v419_v20  ;;  %v442_v20 = vld [vmem:[#allocation3 + $0x8] sm:$0xff] }
 0x16c   : > { %v420_v23 = vsub.f32 %v1173_v19, %v1181_v22  ;;  %528 = vst.msk [vmem:[#allocation2 + $0x8] sm:$0xff] %vm326_vm2, %v1181_v22  ;;  %432 = vperm.xlu1 %1000, %v1181_v22  }
 0x16d   : > { %v546_v32 = vpop.permute.xlu0 %545 }
 0x16e   : > { %v551_v35 = vsel %vm335_vm0, %v546_v32, 0  ;;  %v423_v14 = vmul.f32 1.442695, %v420_v23 }
 0x170   : > { %538 = vrot.lane.b32.xlu1 %v1005_v24, %s1060_s30 }
 0x1e3   : > { %v428_v26 = vpop.permute.xlu1 %427 }
 0x1e4   : > { %v435_v27 = vsub.f32 %v403_v7, %v428_v26  ;;  %v629_v26 = vld [vmem:[#allocation3 + $0x18] sm:$0xff] }
 0x1e6   : > { %v437_v28 = vmul.f32 1.442695, %v435_v27 }
 0x1e7   : > { %v433_v29 = vpop.permute.xlu1 %432 }
 0x1e8   : > { %v436_v30 = vsub.f32 %v406_v11, %v433_v29  ;;  %1008 = vpow2.f32 %v437_v28 }
 0x1ea   : > { %v439_v31 = vmul.f32 1.442695, %v436_v30 }
 0x1eb   : > { %v539_v37 = vpop.permute.xlu1 %538 }
 0x1ec   : > { %1010 = vpow2.f32 %v439_v31 }
 0x1f5   : > { %v1009_v33 = vpop.eup %1008 }
 0x1f9   : > { %v1011_v34 = vpop.eup %1010 }
 0x1fa   : > { %v470_v36 = vpack.c.bf16 %v1011_v34, %v1009_v33  ;;  %v448_v9 = vsel %vm335_vm0, %v1011_v34, 0.0 }
 0x1fc   : > { %955 = vmatmul.mubr.msk.bf16.vlgmr.msra.gmra.mxu1 %vm335_vm0, %v470_v36 }
 0x1fd   : > { %959 = vmatpush3.bf16.xpose.msra.mxu1 %v551_v35  ;;  %960 = vmatprep.mubr.msk.bf16.mxu1 %vm1057_vm1, %v1056_v0 }
 0x204   : > { %961 = vmatmul.mubr.msk.bf16.vlgmr.msra.gmra.mxu1 %vm335_vm0, %v539_v37 }
 0x2bc   : > { %v1203_v38 = vpop.f32.mrf.mxu1 }
 0x2be   : > { %v956_v39 = vpop.f32.mrf.mxu1 }
 0x2c0   : > { %v1205_v40 = vpop.f32.mrf.mxu1 }
 0x2c2   : > { %v957_v41 = vpop.f32.mrf.mxu1 }
 0x2c4   : > { %v587_v42 = vpop.f32.mrf.mxu1 }
 0x2c5   : > { %v588_v43 = vadd.f32 %v1160_v5, %v587_v42 }
 0x2c6   : > { %v962_v44 = vpop.f32.mrf.mxu1 }
 0x2c7   : > { %v597_v45 = vsel %vm335_vm0, %v588_v43, -inf  ;;  %v643_v44 = vld [vmem:[#allocation4 + $0x10] sm:$0xff] }
 0x2c8   : > { %598 = vmax.xlane.f32.xlu1 %v597_v45  ;;  %v590_v46 = vpop.f32.mrf.mxu1 }
 0x2c9   : > { %v591_v47 = vadd.f32 %v1160_v5, %v590_v46  ;;  %v445_v5 = vsel %vm335_vm0, %v1009_v33, 0.0  ;;  %v644_v46 = vld [vmem:[#allocation4 + $0x18] sm:$0xff] }
 0x2ca   : > { %v963_v48 = vpop.f32.mrf.mxu1 }
 0x2cb   : > { %v600_v49 = vsel %vm335_vm0, %v591_v47, -inf }
 0x2cc   : > { %601 = vmax.xlane.f32.xlu0 %v600_v49 }
 0x351   : > { %v599_v51 = vpop.xlane.xlu1 %598 }
 0x352   : > { %v603_v52 = vmax.f32 %v595_v50, %v599_v51 }
 0x354   : > { %v605_v54 = vsub.f32 %v595_v50, %v603_v52  ;;  %716 = vst.msk [vmem:[#allocation2 + $0x10] sm:$0xff] %vm326_vm2, %v603_v52  ;;  %613 = vperm.xlu1 %1000, %v603_v52  }
 0x355   : > { %v602_v56 = vpop.xlane.xlu0 %601 }
 0x356   : > { %v604_v57 = vmax.f32 %v596_v53, %v602_v56  ;;  %v607_v8 = vmul.f32 1.442695, %v605_v54 }
 0x358   : > { %v606_v58 = vsub.f32 %v596_v53, %v604_v57  ;;  %717 = vst.msk [vmem:[#allocation2 + $0x18] sm:$0xff] %vm326_vm2, %v604_v57  ;;  %618 = vperm.xlu0 %1001, %v604_v57   ;;  %665 = vrot.lane.b32.xlu1 %v1007_v55, %s1060_s30 }
 0x35a   : > { %v609_v10 = vmul.f32 1.442695, %v606_v58  ;;  %v456_v58 = vld [vmem:[#allocation4] sm:$0xff] }
 0x3cf   : > { %v614_v59 = vpop.permute.xlu1 %613 }
 0x3d0   : > { %v621_v60 = vsub.f32 %v588_v43, %v614_v59 }
 0x3d2   : > { %v623_v61 = vmul.f32 1.442695, %v621_v60 }
 0x3d3   : > { %v619_v62 = vpop.permute.xlu0 %618  ;;  %v666_v63 = vpop.permute.xlu1 %665 }
 0x3d4   : > { %1012 = vpow2.f32 %v623_v61  ;;  %v622_v0 = vsub.f32 %v591_v47, %v619_v62  ;;  %965 = vmatpush3.bf16.msra.mxu0 %v666_v63 }
 0x3d6   : > { %v625_v1 = vmul.f32 1.442695, %v622_v0 }
 0x3d8   : > { %1014 = vpow2.f32 %v625_v1  ;;  %v457_v1 = vld [vmem:[#allocation4 + $0x8] sm:$0xff] }
 0x3d9   : > { %1016 = vpow2.f32 %v607_v8 }
 0x3da   : > { %1018 = vpow2.f32 %v609_v10 }
 0x3db   : > { %1020 = vpow2.f32 %v421_v13 }
 0x3dc   : > { %1022 = vpow2.f32 %v423_v14 }
 0x3e1   : > { %v1013_v2 = vpop.eup %1012 }
 0x3e2   : > { %v632_v3 = vsel %vm335_vm0, %v1013_v2, 0.0 }
 0x3e3   : > { %633 = vadd.xlane.f32.xlu1 %v632_v3 }
 0x3e5   : > { %v1015_v4 = vpop.eup %1014 }
 0x3e6   : > { %v635_v6 = vsel %vm335_vm0, %v1015_v4, 0.0  ;;  %v657_v7 = vpack.c.bf16 %v1015_v4, %v1013_v2  ;;  %v1017_v11 = vpop.eup %1016 }
 0x3e7   : > { %446 = vadd.xlane.f32.xlu1 %v445_v5  ;;  %636 = vadd.xlane.f32.xlu0 %v635_v6  ;;  %v1019_v12 = vpop.eup %1018  ;;  %v630_v17 = vmul.f32 %v1017_v11, %v628_v15 }
 0x3e8   : > { %967 = vmatmul.mubr.msk.bf16.vlgmr.msra.gmra.mxu0 %vm335_vm0, %v657_v7  ;;  %v1021_v21 = vpop.eup %1020  ;;  %v631_v29 = vmul.f32 %v1019_v12, %v629_v26 }
 0x3e9   : > { %v443_v28 = vmul.f32 %v1021_v21, %v441_v25  ;;  %v1023_v30 = vpop.eup %1022 }
 0x3ea   : > { %v444_v19 = vmul.f32 %v1023_v30, %v442_v20 }
 0x3eb   : > { %449 = vadd.xlane.f32.xlu1 %v448_v9 }
 0x3fc   : > { %647 = vperm.xlu1 %1000, %v1017_v11  }
 0x400   : > { %652 = vperm.xlu1 %1000, %v1019_v12  }
 0x46c   : > { %v634_v24 = vpop.xlane.xlu1 %633 }
 0x46d   : > { %v638_v27 = vadd.f32 %v634_v24, %v630_v17 }
 0x46f   : > { %640 = vst.msk [vmem:[#allocation3 + $0x10] sm:$0xff] %vm326_vm2, %v638_v27 }
 0x470   : > { %v447_v16 = vpop.xlane.xlu1 %446  ;;  %v637_v18 = vpop.xlane.xlu0 %636 }
 0x471   : > { %v451_v31 = vadd.f32 %v447_v16, %v443_v28  ;;  %v639_v32 = vadd.f32 %v637_v18, %v631_v29 }
 0x473   : > { %454 = vst.msk [vmem:[#allocation3] sm:$0xff] %vm326_vm2, %v451_v31  ;;  %641 = vst.msk [vmem:[#allocation3 + $0x18] sm:$0xff] %vm326_vm2, %v639_v32 }
 0x474   : > { %v450_v22 = vpop.xlane.xlu1 %449 }
 0x475   : > { %v452_v23 = vadd.f32 %v450_v22, %v444_v19 }
 0x476   : > { %v750_v33 = vld [vmem:[#allocation3 + $0x10] sm:$0xff] }
 0x477   : > { %455 = vst.msk [vmem:[#allocation3 + $0x8] sm:$0xff] %vm326_vm2, %v452_v23  ;;  %1024 = vrcp.f32 %v750_v33 }
 0x478   : > { %v648_v43 = vpop.permute.xlu1 %647 }
 0x479   : > { %v655_v45 = vmul.f32 %v648_v43, %v643_v44 }
 0x47a   : > { %v751_v34 = vld [vmem:[#allocation3 + $0x18] sm:$0xff]  ;;  %v721_v35 = vld [vmem:[#allocation3] sm:$0xff] }
 0x47b   : > { %1026 = vrcp.f32 %v751_v34 }
 0x47c   : > { %1028 = vrcp.f32 %v721_v35  ;;  %v653_v47 = vpop.permute.xlu1 %652 }
 0x47d   : > { %v656_v51 = vmul.f32 %v653_v47, %v644_v46 }
 0x47e   : > { %v722_v37 = vld [vmem:[#allocation3 + $0x8] sm:$0xff] }
 0x47f   : > { %1030 = vrcp.f32 %v722_v37 }
 0x484   : > { %v1025_v36 = vpop.eup %1024 }
 0x485   : > { %758 = vperm.xlu1 %1000, %v1025_v36  }
 0x488   : > { %v1027_v39 = vpop.eup %1026 }
 0x489   : > { %460 = vperm.xlu1 %1000, %v1021_v21   ;;  %763 = vperm.xlu0 %1001, %v1027_v39   ;;  %v1029_v41 = vpop.eup %1028 }
 0x48c   : > { %v1031_v42 = vpop.eup %1030 }
 0x48d   : > { %465 = vperm.xlu1 %1000, %v1023_v30  }
 0x491   : > { %729 = vperm.xlu1 %1000, %v1029_v41  }
 0x495   : > { %734 = vperm.xlu1 %1000, %v1031_v42  }
 0x4a8   : > { %v705_v48 = vpop.f32.mrf.mxu0 }
 0x4a9   : > { %v712_v49 = vadd.f32 %v705_v48, %v655_v45 }
 0x4aa   : > { %v968_v50 = vpop.f32.mrf.mxu0 }
 0x4ab   : > { %714 = vst.msk [vmem:[#allocation4 + $0x10] sm:$0xff] %vm335_vm0, %v712_v49 }
 0x4ac   : > { %v708_v52 = vpop.f32.mrf.mxu0 }
 0x4ad   : > { %v713_v53 = vadd.f32 %v708_v52, %v656_v51 }
 0x4ae   : > { %v969_v54 = vpop.f32.mrf.mxu0 }
 0x4af   : > { %715 = vst.msk [vmem:[#allocation4 + $0x18] sm:$0xff] %vm335_vm0, %v713_v53 }
 0x4b2   : > { %v754_v56 = vld [vmem:[#allocation4 + $0x10] sm:$0xff] }
 0x4b6   : > { %v755_v62 = vld [vmem:[#allocation4 + $0x18] sm:$0xff] }
 0x500   : > { %v759_v55 = vpop.permute.xlu1 %758 }
 0x501   : > { %v766_v57 = vmul.f32 %v759_v55, %v754_v56 }
 0x503   : > { %v936_v59 = vpack.c.bf16 %v766_v57, %v766_v57 }
 0x504   : > { %v461_v60 = vpop.permute.xlu1 %460  ;;  %v764_v61 = vpop.permute.xlu0 %763 }
 0x505   : > { %v468_v63 = vmul.f32 %v461_v60, %v456_v58  ;;  %v767_v0 = vmul.f32 %v764_v61, %v755_v62  ;;  %774 = vrot.lane.b32.xlu1 %v936_v59, %s1061_s8 }
 0x507   : > { %v523_v2 = vadd.f32 %v1203_v38, %v468_v63  ;;  %v937_v3 = vpack.c.bf16 %v767_v0, %v767_v0 }
 0x508   : > { %v466_v4 = vpop.permute.xlu1 %465 }
 0x509   : > { %525 = vst.msk [vmem:[#allocation4] sm:$0xff] %vm335_vm0, %v523_v2  ;;  %v469_v5 = vmul.f32 %v466_v4, %v457_v1  ;;  %776 = vrot.lane.b32.xlu0 %v937_v3, %s1061_s8 }
 0x50b   : > { %v524_v6 = vadd.f32 %v1205_v40, %v469_v5 }
 0x50c   : > { %v730_v7 = vpop.permute.xlu1 %729 }
 0x50d   : > { %526 = vst.msk [vmem:[#allocation4 + $0x8] sm:$0xff] %vm335_vm0, %v524_v6 }
 0x510   : > { %v725_v8 = vld [vmem:[#allocation4] sm:$0xff]  ;;  %v735_v11 = vpop.permute.xlu1 %734 }
 0x511   : > { %v737_v9 = vmul.f32 %v730_v7, %v725_v8 }
 0x513   : > { %v934_v10 = vpack.c.bf16 %v737_v9, %v737_v9 }
 0x514   : > { %v726_v38 = vld [vmem:[#allocation4 + $0x8] sm:$0xff] }
 0x515   : > { %748 = vst.msk [vmem:[%s318_s11] sm:$0xf] %vm747_vm3, %v934_v10  ;;  %v738_v12 = vmul.f32 %v735_v11, %v726_v38 }
 0x517   : > { %v935_v13 = vpack.c.bf16 %v738_v12, %v738_v12 }
 0x519   : > { %749 = vst.msk [vmem:[%s318_s11 + $0x4] sm:$0xf] %vm747_vm3, %v935_v13 }
 0x577   : > { %v775_v14 = vpop.permute.xlu1 %774 }
 0x578   : > { %781 = vst.msk [vmem:[%s318_s11] sm:$0xf] %vm780_vm4, %v775_v14 }
 0x57b   : > { %v777_v40 = vpop.permute.xlu0 %776 }
 0x57c   : > { %782 = vst.msk [vmem:[%s318_s11 + $0x4] sm:$0xf] %vm780_vm4, %v777_v40 }
 0x57d PF: > { %s14_s17 = sadd.s32 1, %s1054_s17   ;;  %s1254_s15 = smov %s1050_s16 }
 0x57e   : > { %p11_p6 = scmp.ge.s32.totalorder %s14_s17, 4   ;;  %s1255_s16 = smov %s1257_s18 }
 0x580   :  { %13 = sbr.rel (!%p11_p6) target bundleno = 2 (0x2), region = 86 }

// kernel: sentiment_forward.21
= control target key start
LH: loop header
LB: loop body
LE: loop exit
PB: predicated region body
PF: predicated region fallthrough
CT: control target
= control target key end

     0   :  { %v648_v1 = vmov 0.0   ;;  %vm649_vm0 = vmmov 0   ;;  %vm58_vm1 = vcmask 261120   ;;  %s826_s0 = inlined_call_operand.vmem [shape: bf16[2,32], index: 0, kind: input, shape index: {}]   ;;  %s827_s1 = inlined_call_operand.vmem [shape: bf16[32,32], index: 1, kind: input, shape index: {}]   ;;  %s828_s2 = inlined_call_operand.vmem [shape: f32[1,32], index: 2, kind: input, shape index: {}]   ;;  %s829_s3 = inlined_call_operand.vmem [shape: bf16[32,256], index: 3, kind: input, shape index: {}]   ;;  %s830_s4 = inlined_call_operand.vmem [shape: f32[1,256], index: 4, kind: input, shape index: {}]   ;;  %s831_s5 = inlined_call_operand.vmem [shape: bf16[256,128], index: 5, kind: input, shape index: {}]   ;;  %s832_s6 = inlined_call_operand.vmem [shape: f32[1,128], index: 6, kind: input, shape index: {}]   ;;  %s833_s7 = inlined_call_operand.vmem [shape: bf16[128,128], index: 7, kind: input, shape index: {}]   ;;  %s834_s8 = inlined_call_operand.vmem [shape: f32[1,128], index: 8, kind: input, shape index: {}]   ;;  %s835_s9 = inlined_call_operand.hbm [shape: f32[2,128], index: 9, kind: output, shape index: {}]  }
   0x1   :  { %v592_v0 = vld [vmem:[%s827_s1 + $0x8] sm:$0xff]   ;;  %560 = vmatprep.subr.bf16.mxu0 %v648_v1  ;;  %v593_v2 = vld [vmem:[%s827_s1] sm:$0xff]   ;;  %564 = vmatprep.mubr.msk.bf16.mxu0 %vm649_vm0, %v648_v1 }
   0x2   :  { %561 = vmatpush3.bf16.msra.mxu0 %v592_v0  ;;  %v34_v3 = vld [vmem:[%s826_s0] sm:$0x1] }
   0x3   :  { %562 = vmatprep.subr.bf16.mxu0 %v648_v1 }
   0x6   :  { %563 = vmatpush3.bf16.msra.mxu0 %v593_v2 }
   0x9   :  { %565 = vmatmul.mubr.msk.bf16.vlgmr.msra.gmra.mxu0 %vm58_vm1, %v34_v3 }
   0xa   :  { %14 = vsyncpa [#allocation3], 0  ;;  %v594_v4 = vld [vmem:[%s829_s3 + $0x14] ss:$8 sps:$4 sm:$0xff]   ;;  %v596_v5 = vld [vmem:[%s829_s3 + $0x10] ss:$8 sps:$4 sm:$0xff]   ;;  %v110_v38 = vlaneseq }
   0xb   :  { %155 = vmatprep.subr.bf16.mxu1 %v594_v4  ;;  %v597_v6 = vld [vmem:[%s829_s3 + $0x4] ss:$8 sps:$4 sm:$0xff]   ;;  %v599_v7 = vld [vmem:[%s829_s3] ss:$8 sps:$4 sm:$0xff]   ;;  %v650_v8 = vmov 0   ;;  %v600_v9 = vld [vmem:[%s831_s5 + $0x78] sm:$0xff]  }
   0xc   :  { %156 = vmatpush1.bf16.msra.mxu1 %v596_v5  ;;  %175 = vmatprep.mubr.bf16.mxu1 %v650_v8  ;;  %v601_v10 = vld [vmem:[%s831_s5 + $0x38] sm:$0xff]   ;;  %v602_v11 = vld [vmem:[%s831_s5 + $0x70] sm:$0xff]   ;;  %v604_v13 = vld [vmem:[%s831_s5 + $0x68] sm:$0xff]   ;;  %v111_v39 = vshrl.u32 %v110_v38, 7  ;;  %s651_s26 = smov [#allocation2]  }
   0xd   :  { %157 = vmatprep.subr.bf16.mxu1 %v597_v6  ;;  %529 = vmatprep.subr.bf16.mxu0 %v600_v9  ;;  %v603_v12 = vld [vmem:[%s831_s5 + $0x30] sm:$0xff]   ;;  %v605_v14 = vld [vmem:[%s831_s5 + $0x28] sm:$0xff]   ;;  %v606_v15 = vld [vmem:[%s831_s5 + $0x60] sm:$0xff]  }
   0xe   :  { %530 = vmatpush3.bf16.msra.mxu0 %v601_v10  ;;  %v607_v16 = vld [vmem:[%s831_s5 + $0x20] sm:$0xff]   ;;  %v608_v17 = vld [vmem:[%s831_s5 + $0x58] sm:$0xff]   ;;  %v610_v19 = vld [vmem:[%s831_s5 + $0x50] sm:$0xff]   ;;  %v112_v40 = vsub.s32 0, %v111_v39  ;;  %v116_v42 = vsub.s32 1, %v111_v39 }
   0xf   :  { %531 = vmatprep.subr.bf16.mxu0 %v602_v11  ;;  %v609_v18 = vld [vmem:[%s831_s5 + $0x18] sm:$0xff]   ;;  %v611_v20 = vld [vmem:[%s831_s5 + $0x10] sm:$0xff]   ;;  %v491_v21 = vld [vmem:[%s828_s2] ss:$0 sm:$0xff] }
  0x10   :  { %158 = vmatpush1.bf16.msra.mxu1 %v599_v7  ;;  %v612_v29 = vld [vmem:[%s831_s5 + $0x48] sm:$0xff]   ;;  %v614_v31 = vld [vmem:[%s831_s5 + $0x40] sm:$0xff]   ;;  %v616_v33 = vld [vmem:[%s833_s7 + $0x38] sm:$0xff]  }
  0x11   :  { %568 = vmatprep.subr.bf16.mxu1 %v648_v1  ;;  %v613_v30 = vld [vmem:[%s831_s5 + $0x8] sm:$0xff]   ;;  %v615_v32 = vld [vmem:[%s831_s5] sm:$0xff]   ;;  %v617_v34 = vld [vmem:[%s833_s7 + $0x30] sm:$0xff]  }
  0x12   :  { %532 = vmatpush3.bf16.msra.mxu0 %v603_v12  ;;  %v618_v35 = vld [vmem:[%s833_s7 + $0x28] sm:$0xff]   ;;  %v619_v36 = vld [vmem:[%s833_s7 + $0x20] sm:$0xff]   ;;  %v620_v37 = vld [vmem:[%s833_s7 + $0x18] sm:$0xff]  }
  0x13   :  { %533 = vmatprep.subr.bf16.mxu0 %v604_v13  ;;  %v108_v41 = vld [vmem:[%s830_s4] sm:$0x3]  ;;  %v621_v55 = vld [vmem:[%s833_s7 + $0x10] sm:$0xff]   ;;  %v622_v56 = vld [vmem:[%s833_s7 + $0x8] sm:$0xff]  }
  0x14   :  { %v113_v43 = vrot.slane %v108_v41, %v112_v40  ;;  %v117_v44 = vrot.slane %v108_v41, %v116_v42  ;;  %v623_v57 = vld [vmem:[%s833_s7] sm:$0xff]   ;;  %s483_s7 = sshll.u32 %s651_s26, 4  ;;  %s484_s7 = int_to_ptr.vmem [resolvable:$true] %s483_s7 }
  0x15   :  { %v500_v59 = vld [vmem:[%s832_s6] ss:$0 sm:$0xff]  ;;  %s626_s6 = scalar_lea.vmem %s484_s7, 32  ;;  %p631_p1 = scmp.lt.s32.totalorder %s484_s7, %s484_s7 }
  0x16   :  { %534 = vmatpush3.bf16.msra.mxu0 %v605_v14  ;;  %p627_p0 = scmp.ne.s32.totalorder %s484_s7, %s626_s6  ;;  %p632_p2 = scmp.lt.s32.totalorder %s626_s6, %s626_s6 }
  0x17   :  { %535 = vmatprep.subr.bf16.mxu0 %v606_v15 }
  0x18   :  { %p633_p3 = por %p632_p2, %p631_p1 }
  0x1a   :  { %536 = vmatpush3.bf16.msra.mxu0 %v607_v16  ;;  %p634_p4 = pnand %p633_p3, %p627_p0 }
  0x1b   :  { %537 = vmatprep.subr.bf16.mxu0 %v608_v17 }
  0x1e   :  { %538 = vmatpush3.bf16.msra.mxu0 %v609_v18 }
  0x1f   :  { %539 = vmatprep.subr.bf16.mxu0 %v610_v19 }
  0x22   :  { %540 = vmatpush3.bf16.msra.mxu0 %v611_v20 }
  0x23   :  { %541 = vmatprep.subr.bf16.mxu0 %v612_v29 }
  0x26   :  { %542 = vmatpush3.bf16.msra.mxu0 %v613_v30 }
  0x27   :  { %543 = vmatprep.subr.bf16.mxu0 %v614_v31 }
  0x2a   :  { %544 = vmatpush3.bf16.msra.mxu0 %v615_v32 }
  0xc9   :  { %v96_v22 = vpop.f32.mrf.mxu0 }
  0xca   :  { %v97_v23 = vadd.f32 %v491_v21, %v96_v22 }
  0xcb   :  { %v566_v24 = vpop.f32.mrf.mxu0 }
  0xcc   :  { %624 = vtanh.f32 %v97_v23 }
  0xcd   :  { %v99_v25 = vpop.f32.mrf.mxu0 }
  0xcf   :  { %v567_v26 = vpop.f32.mrf.mxu0 }
  0xd9   :  { %v625_v27 = vpop.eup %624 }
  0xda   :  { %v103_v28 = vpack.c.bf16 %v625_v27, %v625_v27 }
  0xdc   :  { %499 = vmatmul.mubr.msk.bf16.vlgmr.msra.gmra.mxu1 %vm58_vm1, %v103_v28 }
  0xdd   :  { %584 = vmatprep.mubr.msk.bf16.mxu1 %vm649_vm0, %v648_v1  ;;  %569 = vmatpush3.bf16.msra.mxu1 %v616_v33 }
  0xde   :  { %570 = vmatprep.subr.bf16.mxu1 %v648_v1 }
  0xe1   :  { %571 = vmatpush3.bf16.msra.mxu1 %v617_v34 }
  0xe2   :  { %572 = vmatprep.subr.bf16.mxu1 %v648_v1 }
  0xe5   :  { %573 = vmatpush3.bf16.msra.mxu1 %v618_v35 }
  0xe6   :  { %574 = vmatprep.subr.bf16.mxu1 %v648_v1 }
  0xe9   :  { %575 = vmatpush3.bf16.msra.mxu1 %v619_v36 }
  0xea   :  { %576 = vmatprep.subr.bf16.mxu1 %v648_v1 }
  0xed   :  { %577 = vmatpush3.bf16.msra.mxu1 %v620_v37 }
  0xee   :  { %578 = vmatprep.subr.bf16.mxu1 %v648_v1 }
  0xf1   :  { %579 = vmatpush3.bf16.msra.mxu1 %v621_v55 }
  0xf2   :  { %580 = vmatprep.subr.bf16.mxu1 %v648_v1 }
  0xf5   :  { %581 = vmatpush3.bf16.msra.mxu1 %v622_v56 }
  0xf6   :  { %582 = vmatprep.subr.bf16.mxu1 %v648_v1  ;;  %v517_v1 = vld [vmem:[%s834_s8] ss:$0 sm:$0xff] }
  0xf9   :  { %583 = vmatpush3.bf16.msra.mxu1 %v623_v57 }
 0x19c   :  { %v177_v45 = vpop.f32.mrf.mxu1 }
 0x19d   :  { %v178_v46 = vadd.f32 %v177_v45, %v113_v43 }
 0x19e   :  { %v179_v47 = vpop.f32.mrf.mxu1 }
 0x19f   :  { %v180_v48 = vadd.f32 %v179_v47, %v117_v44  ;;  %v184_v49 = vmax.f32 %v178_v46, 0.0 }
 0x1a0   :  { %v181_v50 = vpop.f32.mrf.mxu1 }
 0x1a1   :  { %v185_v51 = vmax.f32 %v180_v48, 0.0  ;;  %v186_v54 = vpack.c.bf16 %v184_v49, %v184_v49 }
 0x1a2   :  { %v182_v52 = vpop.f32.mrf.mxu1 }
 0x1a3   :  { %v187_v53 = vpack.c.bf16 %v185_v51, %v185_v51 }
 0x1a5   :  { %355 = vmatprep.mubr.bf16.mxu0 %v187_v53 }
 0x1a6   :  { %356 = vmatmul.mubr.bf16.vlgmr.msra.gmra.mxu0 %v186_v54 }
 0x266   :  { %v545_v58 = vpop.f32.mrf.mxu0 }
 0x268   :  { %v546_v60 = vpop.f32.mrf.mxu0 }
 0x269   :  { %v547_v61 = vadd.f32 %v546_v60, %v545_v58 }
 0x26a   :  { %v548_v62 = vpop.f32.mrf.mxu0 }
 0x26b   :  { %v358_v63 = vadd.f32 %v547_v61, %v500_v59 }
 0x26c   :  { %v549_v0 = vpop.f32.mrf.mxu0 }
 0x26d   :  { %v363_v2 = vmax.f32 %v358_v63, 0.0 }
 0x26f   :  { %v364_v3 = vpack.c.bf16 %v363_v2, %v363_v2 }
 0x271   :  { %585 = vmatmul.mubr.bf16.vlgmr.msra.gmra.mxu1 %v364_v3 }
 0x331   :  { %v470_v4 = vpop.f32.mrf.mxu1 }
 0x332   :  { %v471_v5 = vadd.f32 %v517_v1, %v470_v4 }
 0x333   :  { %v586_v6 = vpop.f32.mrf.mxu1 }
 0x334   :  { %476 = vst [vmem:[#allocation2] sm:$0x3] %v471_v5 }
 0x335   :  { %v473_v7 = vpop.f32.mrf.mxu1 }
 0x336   :  { %637 = shalt.err (!%p634_p4)
}
 0x337   :  { %486 = dma.vmem_to_hbm [thread:$0]  %s484_s7, 32, %s835_s9, [#allocation3]   ;;  %v587_v8 = vpop.f32.mrf.mxu1 }
 0x338   :  { %646 = dma.done.wait [#allocation3], 32  }
 0x339   :  { %647 = vsyncadd [#allocation3], 4294967264 }
 0x33a   :  { %490 = vsyncpa [#allocation3], 1 }

</bundles_post_ra>
